<compile_context>
chip_gen: v5e
topology: v5e:2x2
jax: 0.10.0
libtpu: 0.0.40
codegen_flags: <defaults>
</compile_context>

<pallas_src>
import math

import jax
import jax.numpy as jnp
from jax import lax
from jax.experimental import pallas as pl
from jax.experimental.pallas import tpu as pltpu

# Left zero margin (in lanes) for the shifted-window scratch buffers.  All
# scratch *stores* start exactly at lane _MARGIN (tile-aligned); only the
# *loads* use small static offsets around it.
_MARGIN = 128


# ---------------------------------------------------------------------------
# Pallas kernel: one batch sample per grid step, time on the lane axis
# ---------------------------------------------------------------------------
def _eeg_tcnet_kernel(xcol_ref, wa_ref, ba_ref, pool1_ref, ws1_ref,
                      wpw_ref, bpw_ref, pool2_ref,
                      w11_ref, b11_ref, w12_ref, b12_ref, wdown_ref,
                      w21_ref, b21_ref, w22_ref, b22_ref,
                      wc_ref, bc_ref, out_ref,
                      gpad_ref, xpad_ref, xe_ref):
    f32 = jnp.float32
    bf16 = jnp.bfloat16

    T1 = pool1_ref.shape[1]
    T2 = pool2_ref.shape[1]
    KS = ws1_ref.shape[1]
    lps = (KS - 1) // 2
    cpad = w11_ref.shape[0]
    KT = w11_ref.shape[1] // cpad
    ncls = wc_ref.shape[0]

    def elu(v):
        return jnp.where(v > 0, v, jnp.exp(jnp.minimum(v, 0.0)) - 1.0)

    def dot(a, b):
        # default (single-pass bf16) MXU precision, f32 accumulation
        return jnp.dot(a, b, preferred_element_type=f32)

    # ---- EEGNet front end: (time_conv + time_bn + depthwise + dept_bn) folded
    #      into one conv, ELU, AvgPool as a small resident [T, T1] matmul ------
    g = elu(dot(wa_ref[...], xcol_ref[0]) + ba_ref[...])           # [F2, T]
    g = dot(g.astype(bf16), pool1_ref[...])                        # [F2, T1]

    # ---- separable conv: depthwise KS-tap 'same' conv as shifted-slice VPU
    #      FMAs over a zero-margined scratch (no expansion matmuls), then
    #      pointwise 1x1 (+ folded BN), ELU, AvgPool ---------------------------
    gpad_ref[...] = jnp.zeros(gpad_ref.shape, f32)
    gpad_ref[:, _MARGIN:_MARGIN + T1] = g
    off0 = _MARGIN - lps
    sdw = ws1_ref[:, 0:1].astype(f32) * gpad_ref[:, off0:off0 + T1]
    for j in range(1, KS):
        off = _MARGIN - lps + j
        sdw = sdw + ws1_ref[:, j:j + 1].astype(f32) * gpad_ref[:, off:off + T1]
    s = elu(dot(wpw_ref[...], sdw.astype(bf16)) + bpw_ref[...])    # [F2, T1]
    s = dot(s.astype(bf16), pool2_ref[...])                        # [F2, T2]

    # ---- TCN: each causal dilated conv is ONE fused MXU matmul against a
    #      [KT*cpad, T2] shifted-copies scratch (BN folded into the weight) ----
    def causal_conv(x, w_ref, b_ref, dil):
        xpad_ref[...] = jnp.zeros(xpad_ref.shape, f32)
        xpad_ref[:x.shape[0], _MARGIN:_MARGIN + T2] = x
        for j in range(KT):
            off = _MARGIN - (KT - 1 - j) * dil
            xe_ref[j * cpad:(j + 1) * cpad, :] = xpad_ref[:, off:off + T2]
        return dot(w_ref[...], xe_ref[...]) + b_ref[...]           # [cpad, T2]

    # block 1 (dilation 1), residual via 1x1 conv
    h = elu(causal_conv(s, w11_ref, b11_ref, 1))
    h = elu(causal_conv(h, w12_ref, b12_ref, 1))
    t1 = elu(h + dot(wdown_ref[...], s.astype(bf16)))              # [cpad, T2]
    # block 2 (dilation 2), identity residual
    h = elu(causal_conv(t1, w21_ref, b21_ref, 2))
    h = elu(causal_conv(h, w22_ref, b22_ref, 2))
    t2 = elu(h + t1)                                               # [cpad, T2]

    # ---- flatten (channel-major) + constrained linear; lane-dense 128-wide
    #      output block (wrapper takes lane 0).  Padded channel rows of wc and
    #      t2 are exact zeros, so they do not contribute. ----------------------
    prod = wc_ref[...].astype(f32) * t2[None, :, :]                # [ncls, cpad, T2]
    per_ko = jnp.sum(prod, axis=2)                                 # [ncls, cpad]
    logits = jnp.sum(per_ko, axis=1, keepdims=True) + bc_ref[...]  # [ncls, 1]
    out_ref[...] = jnp.broadcast_to(logits, (1, ncls, 128))


# ---------------------------------------------------------------------------
# one-time preparation: BN folding, pool matrices, TCN weight padding (hoisted
# out of the per-call path — parameter-only work, no model FLOPs)
# ---------------------------------------------------------------------------
def prepare_eeg_tcnet(params, *, n_samples, pool):
    f32 = jnp.float32
    bf16 = jnp.bfloat16
    p = params

    KL, _, F1, _, _ = p["wt"].shape
    F2, C = p["wd"].shape[1], p["wd"].shape[2]
    D = F2 // F1
    KS = p["ws1"].shape[0]
    KT, nf, _ = p["w11"].shape
    ncls = p["wc"].shape[0]
    T = n_samples
    T1 = T // pool
    T2 = T1 // pool
    cpad = ((max(F2, nf) + 7) // 8) * 8

    # EEGNet front end folded into one conv [F2, C*KL] (+ both BNs) -----------
    wt = p["wt"][:, 0, :, 0, 0].astype(f32)                        # [KL, F1]
    wd = p["wd"][0, :, :, 0].astype(f32)                           # [F2, C]
    tbn_s = p["tbn_s"].reshape(F1)
    tbn_b = p["tbn_b"].reshape(F1)
    dbn_s = p["dbn_s"].reshape(F2)
    dbn_b = p["dbn_b"].reshape(F2)
    f1_of = jnp.arange(F2) // D
    wt_f2 = wt.T[f1_of]                                            # [F2, KL]
    wa = ((dbn_s * tbn_s[f1_of])[:, None, None] * wd[:, :, None]
          * wt_f2[:, None, :]).reshape(F2, C * KL)
    ba = (dbn_s * tbn_b[f1_of] * jnp.sum(wd, axis=1) + dbn_b).reshape(F2, 1)

    # batch-independent AvgPool matrices --------------------------------------
    def pool_mat(n, P):
        r = lax.broadcasted_iota(jnp.int32, (n, n // P), 0)
        c = lax.broadcasted_iota(jnp.int32, (n, n // P), 1)
        return jnp.where(r // P == c, 1.0 / P, 0.0).astype(f32)

    pool1 = pool_mat(T, pool)                                      # [T,  T1]
    pool2 = pool_mat(T1, pool)                                     # [T1, T2]

    # separable conv: per-channel tap weights + (pointwise 1x1 with BN folded) -
    ws1 = p["ws1"][:, 0, :, 0].T.astype(f32)                       # [F2, KS]
    sbn_s = p["sbn_s"].reshape(F2)
    sbn_b = p["sbn_b"].reshape(F2)
    wpw = sbn_s[:, None] * p["ws2"].astype(f32)                    # [F2, F2]
    bpw = sbn_b.reshape(F2, 1).astype(f32)

    # TCN weights: BN scale folded, tap-major, channel dims zero-padded to cpad
    def fold_tcn(w, bn_s, bn_b):
        k, o, cin = w.shape
        wf = jnp.transpose(w.astype(f32), (1, 0, 2)) * bn_s.reshape(o, 1, 1)
        wp = jnp.zeros((cpad, k, cpad), f32).at[:o, :, :cin].set(wf)
        bp = jnp.zeros((cpad, 1), f32).at[:o, 0].set(bn_b.reshape(o))
        return wp.reshape(cpad, k * cpad), bp

    w11, b11 = fold_tcn(p["w11"], p["bn11_s"].reshape(-1), p["bn11_b"].reshape(-1))
    w12, b12 = fold_tcn(p["w12"], p["bn12_s"].reshape(-1), p["bn12_b"].reshape(-1))
    w21, b21 = fold_tcn(p["w21"], p["bn21_s"].reshape(-1), p["bn21_b"].reshape(-1))
    w22, b22 = fold_tcn(p["w22"], p["bn22_s"].reshape(-1), p["bn22_b"].reshape(-1))
    wdown = jnp.zeros((cpad, F2), f32).at[:nf, :].set(p["wdown"].astype(f32))

    # classifier (batch-invariant; channel dim zero-padded to cpad) -----------
    wc = jnp.zeros((ncls, cpad, T2), f32).at[:, :nf, :].set(p["wc"].astype(f32))
    bc = p["bc"].reshape(ncls, 1).astype(f32)

    return dict(
        wa=wa.astype(bf16), ba=ba.astype(f32),
        pool1=pool1.astype(bf16), pool2=pool2.astype(bf16),
        ws1=ws1.astype(bf16), wpw=wpw.astype(bf16), bpw=bpw,
        w11=w11.astype(bf16), b11=b11, w12=w12.astype(bf16), b12=b12,
        wdown=wdown.astype(bf16),
        w21=w21.astype(bf16), b21=b21, w22=w22.astype(bf16), b22=b22,
        wc=wc.astype(bf16), bc=bc,
    )


# ---------------------------------------------------------------------------
# hot-path wrapper: im2col of x + the pallas_call (batch grid, resident weights)
# ---------------------------------------------------------------------------
@jax.jit
def eeg_tcnet_forward(x, prep):
    """x: [B, 1, C, T] (like the PyTorch module) or [B, C, T]."""
    if x.ndim == 4:
        x = x[:, 0]
    x = x.astype(jnp.float32)
    B, C, T = x.shape

    F2, CKL = prep["wa"].shape
    KL = CKL // C
    T1 = prep["pool1"].shape[1]
    T2 = prep["pool2"].shape[1]
    KS = prep["ws1"].shape[1]
    cpad = prep["w11"].shape[0]
    KT = prep["w11"].shape[1] // cpad
    ncls = prep["wc"].shape[0]

    # im2col of the 'same'-padded input (only per-call wrapper work)
    lp = (KL - 1) // 2
    rp = KL - 1 - lp
    xp = jnp.pad(x, ((0, 0), (0, 0), (lp, rp)))
    xcol = jnp.stack([xp[:, :, j:j + T] for j in range(KL)], axis=2)
    xcol = xcol.reshape(B, C * KL, T).astype(jnp.bfloat16)         # [(c,j), t]

    out = pl.pallas_call(
        _eeg_tcnet_kernel,
        out_shape=jax.ShapeDtypeStruct((B, ncls, 128), jnp.float32),
        grid=(B,),
        in_specs=[
            pl.BlockSpec((1, CKL, T), lambda b: (b, 0, 0)),        # xcol (streamed)
            pl.BlockSpec((F2, CKL), lambda b: (0, 0)),             # wa   (resident)
            pl.BlockSpec((F2, 1), lambda b: (0, 0)),               # ba
            pl.BlockSpec((T, T1), lambda b: (0, 0)),               # pool1
            pl.BlockSpec((F2, KS), lambda b: (0, 0)),              # ws1
            pl.BlockSpec((F2, F2), lambda b: (0, 0)),              # wpw
            pl.BlockSpec((F2, 1), lambda b: (0, 0)),               # bpw
            pl.BlockSpec((T1, T2), lambda b: (0, 0)),              # pool2
            pl.BlockSpec((cpad, KT * cpad), lambda b: (0, 0)),     # w11
            pl.BlockSpec((cpad, 1), lambda b: (0, 0)),             # b11
            pl.BlockSpec((cpad, KT * cpad), lambda b: (0, 0)),     # w12
            pl.BlockSpec((cpad, 1), lambda b: (0, 0)),             # b12
            pl.BlockSpec((cpad, F2), lambda b: (0, 0)),            # wdown
            pl.BlockSpec((cpad, KT * cpad), lambda b: (0, 0)),     # w21
            pl.BlockSpec((cpad, 1), lambda b: (0, 0)),             # b21
            pl.BlockSpec((cpad, KT * cpad), lambda b: (0, 0)),     # w22
            pl.BlockSpec((cpad, 1), lambda b: (0, 0)),             # b22
            pl.BlockSpec((ncls, cpad, T2), lambda b: (0, 0, 0)),   # wc
            pl.BlockSpec((ncls, 1), lambda b: (0, 0)),             # bc
        ],
        out_specs=pl.BlockSpec((1, ncls, 128), lambda b: (b, 0, 0)),
        scratch_shapes=[
            pltpu.VMEM((F2, _MARGIN + T1 + KS), jnp.float32),      # gpad
            pltpu.VMEM((cpad, _MARGIN + T2 + 8), jnp.float32),     # xpad (causal)
            pltpu.VMEM((KT * cpad, T2), jnp.float32),              # xe
        ],
        compiler_params=pltpu.CompilerParams(
            dimension_semantics=("parallel",)),
    )(xcol, prep["wa"], prep["ba"], prep["pool1"], prep["ws1"],
      prep["wpw"], prep["bpw"], prep["pool2"],
      prep["w11"], prep["b11"], prep["w12"], prep["b12"], prep["wdown"],
      prep["w21"], prep["b21"], prep["w22"], prep["b22"],
      prep["wc"], prep["bc"])

    return out[:, :, 0]                                            # [B, n_classes]


# ---------------------------------------------------------------------------
# pure-JAX (XLA, outside Pallas) reference for validation
# ---------------------------------------------------------------------------
def _elu(x):
    return jnp.where(x > 0, x, jnp.exp(jnp.minimum(x, 0.0)) - 1.0)


def _pad_last(x, left, right):
    parts = []
    if left:
        parts.append(jnp.zeros(x.shape[:-1] + (left,), x.dtype))
    parts.append(x)
    if right:
        parts.append(jnp.zeros(x.shape[:-1] + (right,), x.dtype))
    return jnp.concatenate(parts, axis=-1) if len(parts) > 1 else x


def _bmatmul_left(w, x):
    return jnp.stack(
        [jnp.dot(w, x[b], precision=lax.Precision.HIGHEST,
                 preferred_element_type=jnp.float32)
         for b in range(x.shape[0])], axis=0)


def _bmatmul_right(x, w):
    return jnp.stack(
        [jnp.dot(x[b], w, precision=lax.Precision.HIGHEST,
                 preferred_element_type=jnp.float32)
         for b in range(x.shape[0])], axis=0)


def _pool_matrix(T, P):
    r = lax.broadcasted_iota(jnp.int32, (T, T // P), 0)
    c = lax.broadcasted_iota(jnp.int32, (T, T // P), 1)
    return jnp.where(r // P == c, jnp.float32(1.0 / P), jnp.float32(0.0))


def _causal_conv1d(x, w, dilation):
    B, Cin, T = x.shape
    K, Cout, _ = w.shape
    pad = (K - 1) * dilation
    xp = _pad_last(x, pad, 0)
    out = jnp.zeros((B, Cout, T), jnp.float32)
    for j in range(K):
        out = out + _bmatmul_left(w[j], xp[:, :, j * dilation:j * dilation + T])
    return out


def _tcn_block(x, w1, s1, b1, w2, s2, b2, wdown, dilation):
    h = _causal_conv1d(x, w1, dilation)
    h = _elu(h * s1 + b1)
    h = _causal_conv1d(h, w2, dilation)
    h = _elu(h * s2 + b2)
    res = x if wdown is None else _bmatmul_left(wdown, x)
    return _elu(h + res)


_PARAM_ORDER = ["wt", "tbn_s", "tbn_b", "wd", "dbn_s", "dbn_b",
                "ws1", "ws2", "sbn_s", "sbn_b",
                "w11", "bn11_s", "bn11_b", "w12", "bn12_s", "bn12_b", "wdown",
                "w21", "bn21_s", "bn21_b", "w22", "bn22_s", "bn22_b",
                "wc", "bc"]


def _forward(x, wt, tbn_s, tbn_b, wd, dbn_s, dbn_b, ws1, ws2, sbn_s, sbn_b,
             w11, bn11_s, bn11_b, w12, bn12_s, bn12_b, wdown,
             w21, bn21_s, bn21_b, w22, bn22_s, bn22_b,
             wc, bc, *, pool):
    x = x.astype(jnp.float32)
    B, C, T = x.shape
    KL, _, F1, _, _ = wt.shape
    F2 = wd.shape[1]

    lp = (KL - 1) // 2
    rp = (KL - 1) - lp
    xp = _pad_last(x, lp, rp)
    h = jnp.zeros((B, F1, C, T), jnp.float32)
    for j in range(KL):
        h = h + wt[j] * xp[:, None, :, j:j + T]
    h = h * tbn_s + tbn_b

    D = F2 // F1
    h_exp = jnp.broadcast_to(h[:, :, None, :, :],
                             (B, F1, D, C, T)).reshape(B, F2, C, T)
    g = jnp.sum(h_exp * wd, axis=2)
    g = _elu(g * dbn_s + dbn_b)
    T1 = T // pool
    g = _bmatmul_right(g, _pool_matrix(T, pool))

    KS = ws1.shape[0]
    lp = (KS - 1) // 2
    rp = (KS - 1) - lp
    gp = _pad_last(g, lp, rp)
    s = jnp.zeros((B, F2, T1), jnp.float32)
    for j in range(KS):
        s = s + ws1[j] * gp[:, :, j:j + T1]
    s = _bmatmul_left(ws2, s)
    s = _elu(s * sbn_s + sbn_b)
    s = _bmatmul_right(s, _pool_matrix(T1, pool))

    t = _tcn_block(s, w11, bn11_s, bn11_b, w12, bn12_s, bn12_b, wdown, dilation=1)
    t = _tcn_block(t, w21, bn21_s, bn21_b, w22, bn22_s, bn22_b, None, dilation=2)

    logits = jnp.sum(t[:, None, :, :] * wc[None, :, :, :], axis=(2, 3)) + bc
    return logits.astype(jnp.float32)


# ---------------------------------------------------------------------------
# deterministic synthetic parameter initialization (matches module shapes)
# ---------------------------------------------------------------------------
def _glorot(key, shape, fan_in, fan_out):
    limit = math.sqrt(6.0 / (fan_in + fan_out))
    return jax.random.uniform(key, shape, jnp.float32, -limit, limit)


def _renorm(w, max_norm):
    flat = w.reshape(w.shape[0], -1)
    n = jnp.sqrt(jnp.sum(flat * flat, axis=1, keepdims=True))
    scale = jnp.minimum(1.0, max_norm / jnp.maximum(n, 1e-12))
    return (flat * scale).reshape(w.shape)


def _bn_fold(key, num_feat, eps=1e-5):
    k1, k2, k3, k4 = jax.random.split(key, 4)
    gamma = 1.0 + 0.1 * jax.random.normal(k1, (num_feat,))
    beta = 0.1 * jax.random.normal(k2, (num_feat,))
    mean = 0.1 * jax.random.normal(k3, (num_feat,))
    var = jax.random.uniform(k4, (num_feat,), minval=0.5, maxval=1.5)
    scale = (gamma / jnp.sqrt(var + eps)).astype(jnp.float32)
    shift = (beta - mean * scale).astype(jnp.float32)
    return scale, shift


def make_params(key, *, n_channels, n_samples, F1, D, kern_length, avg_pool,
                tcn_filters, tcn_kernel, n_classes):
    F2 = F1 * D
    nf = tcn_filters
    T2 = n_samples // avg_pool // avg_pool
    ks = jax.random.split(key, 20)
    p = {}

    wt = _glorot(ks[0], (F1, kern_length), kern_length, F1 * kern_length)
    p["wt"] = jnp.transpose(wt)[:, None, :, None, None]
    s, b = _bn_fold(ks[1], F1)
    p["tbn_s"], p["tbn_b"] = s.reshape(1, F1, 1, 1), b.reshape(1, F1, 1, 1)

    wd = _renorm(_glorot(ks[2], (F2, n_channels), n_channels, n_channels), 1.0)
    p["wd"] = wd.reshape(1, F2, n_channels, 1)
    s, b = _bn_fold(ks[3], F2)
    p["dbn_s"], p["dbn_b"] = s.reshape(1, F2, 1), b.reshape(1, F2, 1)

    ws1 = _glorot(ks[4], (F2, 16), 16, 16)
    p["ws1"] = jnp.transpose(ws1)[:, None, :, None]
    p["ws2"] = _glorot(ks[5], (F2, F2), F2, F2)
    s, b = _bn_fold(ks[6], F2)
    p["sbn_s"], p["sbn_b"] = s.reshape(1, F2, 1), b.reshape(1, F2, 1)

    def conv1d_w(k, cin, cout):
        w = _renorm(_glorot(k, (cout, cin, tcn_kernel),
                            cin * tcn_kernel, cout * tcn_kernel), 1.0)
        return jnp.transpose(w, (2, 0, 1))

    p["w11"] = conv1d_w(ks[7], F2, nf)
    s, b = _bn_fold(ks[8], nf)
    p["bn11_s"], p["bn11_b"] = s.reshape(1, nf, 1), b.reshape(1, nf, 1)
    p["w12"] = conv1d_w(ks[9], nf, nf)
    s, b = _bn_fold(ks[10], nf)
    p["bn12_s"], p["bn12_b"] = s.reshape(1, nf, 1), b.reshape(1, nf, 1)
    p["wdown"] = _glorot(ks[11], (nf, F2), F2, nf)

    p["w21"] = conv1d_w(ks[12], nf, nf)
    s, b = _bn_fold(ks[13], nf)
    p["bn21_s"], p["bn21_b"] = s.reshape(1, nf, 1), b.reshape(1, nf, 1)
    p["w22"] = conv1d_w(ks[14], nf, nf)
    s, b = _bn_fold(ks[15], nf)
    p["bn22_s"], p["bn22_b"] = s.reshape(1, nf, 1), b.reshape(1, nf, 1)

    wc = _renorm(_glorot(ks[16], (n_classes, nf * T2), nf * T2, n_classes), 0.25)
    p["wc"] = wc.reshape(n_classes, nf, T2)
    p["bc"] = (0.01 * jax.random.normal(ks[17], (1, n_classes))).astype(jnp.float32)
    return p


# ---------------------------------------------------------------------------
if __name__ == "__main__":
    cfg = dict(n_channels=4, n_samples=128, F1=4, D=2, kern_length=8,
               avg_pool=4, tcn_filters=6, tcn_kernel=4, n_classes=4)
    key = jax.random.PRNGKey(0)
    kx, kp = jax.random.split(key)

    # input mirrors the PyTorch module's [batch, 1, n_channels, n_samples]
    x = jax.random.normal(kx, (2, 1, cfg["n_channels"], cfg["n_samples"]),
                          jnp.float32)
    params = make_params(kp, **cfg)

    # one-time parameter folding / constant building (hoisted out of hot path)
    prep = prepare_eeg_tcnet(params, n_samples=cfg["n_samples"],
                             pool=cfg["avg_pool"])
    prep = jax.tree_util.tree_map(jax.block_until_ready, prep)

    out = eeg_tcnet_forward(x, prep)
    out = jax.block_until_ready(out)

    # pure-JAX reference (unfolded params, f32/HIGHEST) to validate the kernel
    ref = _forward(x[:, 0], *[params[k] for k in _PARAM_ORDER],
                   pool=cfg["avg_pool"])
    ref = jax.block_until_ready(ref)

    assert out.shape == (2, cfg["n_classes"])
    assert bool(jnp.all(jnp.isfinite(out)))
    err = float(jnp.max(jnp.abs(out - ref)))
    scale = float(jnp.max(jnp.abs(ref)))
    assert err <= 6e-2 * scale + 6e-3, f"max|diff|={err}, scale={scale}"
    print("KERNEL_OK")
</pallas_src>

<mosaic_0001>
module attributes {stable_mosaic.version = 11 : i64} {
  func.func @_eeg_tcnet_kernel(%arg0: i32, %arg1: memref<1x32x128xbf16, #tpu.memory_space<vmem>>, %arg2: memref<8x32xbf16, #tpu.memory_space<vmem>>, %arg3: memref<8x1xf32, #tpu.memory_space<vmem>>, %arg4: memref<128x32xbf16, #tpu.memory_space<vmem>>, %arg5: memref<8x16xbf16, #tpu.memory_space<vmem>>, %arg6: memref<8x8xbf16, #tpu.memory_space<vmem>>, %arg7: memref<8x1xf32, #tpu.memory_space<vmem>>, %arg8: memref<32x8xbf16, #tpu.memory_space<vmem>>, %arg9: memref<8x32xbf16, #tpu.memory_space<vmem>>, %arg10: memref<8x1xf32, #tpu.memory_space<vmem>>, %arg11: memref<8x32xbf16, #tpu.memory_space<vmem>>, %arg12: memref<8x1xf32, #tpu.memory_space<vmem>>, %arg13: memref<8x8xbf16, #tpu.memory_space<vmem>>, %arg14: memref<8x32xbf16, #tpu.memory_space<vmem>>, %arg15: memref<8x1xf32, #tpu.memory_space<vmem>>, %arg16: memref<8x32xbf16, #tpu.memory_space<vmem>>, %arg17: memref<8x1xf32, #tpu.memory_space<vmem>>, %arg18: memref<4x8x8xbf16, #tpu.memory_space<vmem>>, %arg19: memref<4x1xf32, #tpu.memory_space<vmem>>, %arg20: memref<1x4x128xf32, #tpu.memory_space<vmem>>, %arg21: memref<8x176xf32, #tpu.memory_space<vmem>>, %arg22: memref<8x144xf32, #tpu.memory_space<vmem>>, %arg23: memref<32x8xf32, #tpu.memory_space<vmem>>) attributes {dimension_semantics = [#tpu.dimension_semantics<parallel>], iteration_bounds = array<i64: 2>, scalar_prefetch = 0 : i64, scratch_operands = 3 : i64, tpu.core_type = #tpu.core_type<tc>, window_params = [{transform_indices = @transform_0, window_bounds = array<i64: 1, 32, 128>}, {pipeline_mode = #tpu.pipeline_mode<synchronous>, transform_indices = @transform_1, window_bounds = array<i64: 8, 32>}, {pipeline_mode = #tpu.pipeline_mode<synchronous>, transform_indices = @transform_2, window_bounds = array<i64: 8, 1>}, {pipeline_mode = #tpu.pipeline_mode<synchronous>, transform_indices = @transform_3, window_bounds = array<i64: 128, 32>}, {pipeline_mode = #tpu.pipeline_mode<synchronous>, transform_indices = @transform_4, window_bounds = array<i64: 8, 16>}, {pipeline_mode = #tpu.pipeline_mode<synchronous>, transform_indices = @transform_5, window_bounds = array<i64: 8, 8>}, {pipeline_mode = #tpu.pipeline_mode<synchronous>, transform_indices = @transform_6, window_bounds = array<i64: 8, 1>}, {pipeline_mode = #tpu.pipeline_mode<synchronous>, transform_indices = @transform_7, window_bounds = array<i64: 32, 8>}, {pipeline_mode = #tpu.pipeline_mode<synchronous>, transform_indices = @transform_8, window_bounds = array<i64: 8, 32>}, {pipeline_mode = #tpu.pipeline_mode<synchronous>, transform_indices = @transform_9, window_bounds = array<i64: 8, 1>}, {pipeline_mode = #tpu.pipeline_mode<synchronous>, transform_indices = @transform_10, window_bounds = array<i64: 8, 32>}, {pipeline_mode = #tpu.pipeline_mode<synchronous>, transform_indices = @transform_11, window_bounds = array<i64: 8, 1>}, {pipeline_mode = #tpu.pipeline_mode<synchronous>, transform_indices = @transform_12, window_bounds = array<i64: 8, 8>}, {pipeline_mode = #tpu.pipeline_mode<synchronous>, transform_indices = @transform_13, window_bounds = array<i64: 8, 32>}, {pipeline_mode = #tpu.pipeline_mode<synchronous>, transform_indices = @transform_14, window_bounds = array<i64: 8, 1>}, {pipeline_mode = #tpu.pipeline_mode<synchronous>, transform_indices = @transform_15, window_bounds = array<i64: 8, 32>}, {pipeline_mode = #tpu.pipeline_mode<synchronous>, transform_indices = @transform_16, window_bounds = array<i64: 8, 1>}, {pipeline_mode = #tpu.pipeline_mode<synchronous>, transform_indices = @transform_17, window_bounds = array<i64: 4, 8, 8>}, {pipeline_mode = #tpu.pipeline_mode<synchronous>, transform_indices = @transform_18, window_bounds = array<i64: 4, 1>}, {transform_indices = @transform_19, window_bounds = array<i64: 1, 4, 128>}]} {
    %c0 = arith.constant 0 : index
    %c0_0 = arith.constant 0 : index
    %0 = vector.load %arg2[%c0, %c0_0] : memref<8x32xbf16, #tpu.memory_space<vmem>>, vector<8x32xbf16>
    %c0_1 = arith.constant 0 : index
    %c0_2 = arith.constant 0 : index
    %c0_3 = arith.constant 0 : index
    %1 = vector.load %arg1[%c0_1, %c0_2, %c0_3] : memref<1x32x128xbf16, #tpu.memory_space<vmem>>, vector<1x32x128xbf16>
    %2 = vector.shape_cast %1 : vector<1x32x128xbf16> to vector<32x128xbf16>
    %cst = arith.constant dense<0.000000e+00> : vector<8x128xf32>
    %3 = tpu.matmul %0, %2, %cst {dimension_numbers = #tpu.dot_dimension_numbers<[1], [0], [0], [1], [0, 0, 1, 1], [], []>} : vector<8x32xbf16>, vector<32x128xbf16>, vector<8x128xf32> -> vector<8x128xf32>
    %c0_4 = arith.constant 0 : index
    %c0_5 = arith.constant 0 : index
    %4 = vector.load %arg3[%c0_4, %c0_5] : memref<8x1xf32, #tpu.memory_space<vmem>>, vector<8x1xf32>
    %5 = vector.broadcast %4 : vector<8x1xf32> to vector<8x128xf32>
    %6 = arith.addf %3, %5 : vector<8x128xf32>
    %cst_6 = arith.constant 0.000000e+00 : f32
    %7 = vector.broadcast %cst_6 : f32 to vector<8x128xf32>
    %8 = arith.cmpf ogt, %6, %7 : vector<8x128xf32>
    %cst_7 = arith.constant 0.000000e+00 : f32
    %9 = vector.broadcast %cst_7 : f32 to vector<8x128xf32>
    %10 = arith.minimumf %6, %9 : vector<8x128xf32>
    %11 = math.exp %10 : vector<8x128xf32>
    %cst_8 = arith.constant 1.000000e+00 : f32
    %12 = vector.broadcast %cst_8 : f32 to vector<8x128xf32>
    %13 = arith.subf %11, %12 : vector<8x128xf32>
    %14 = arith.select %8, %6, %13 : vector<8x128xi1>, vector<8x128xf32>
    %15 = arith.truncf %14 : vector<8x128xf32> to vector<8x128xbf16>
    %c0_9 = arith.constant 0 : index
    %c0_10 = arith.constant 0 : index
    %16 = vector.load %arg4[%c0_9, %c0_10] : memref<128x32xbf16, #tpu.memory_space<vmem>>, vector<128x32xbf16>
    %cst_11 = arith.constant dense<0.000000e+00> : vector<8x32xf32>
    %17 = tpu.matmul %15, %16, %cst_11 {dimension_numbers = #tpu.dot_dimension_numbers<[1], [0], [0], [1], [0, 0, 1, 1], [], []>} : vector<8x128xbf16>, vector<128x32xbf16>, vector<8x32xf32> -> vector<8x32xf32>
    %cst_12 = arith.constant 0.000000e+00 : f32
    %18 = vector.broadcast %cst_12 : f32 to vector<8x176xf32>
    %c0_13 = arith.constant 0 : index
    %c0_14 = arith.constant 0 : index
    %19 = vector.load %arg21[%c0_13, %c0_14] : memref<8x176xf32, #tpu.memory_space<vmem>>, vector<8x176xf32>
    tpu.vector_store %arg21[%c0_13, %c0_14], %18 {strides = array<i32>} : memref<8x176xf32, #tpu.memory_space<vmem>>, vector<8x176xf32>,
    %c0_15 = arith.constant 0 : index
    %c128 = arith.constant 128 : index
    %20 = vector.load %arg21[%c0_15, %c128] : memref<8x176xf32, #tpu.memory_space<vmem>>, vector<8x32xf32>
    tpu.vector_store %arg21[%c0_15, %c128], %17 {strides = array<i32>} : memref<8x176xf32, #tpu.memory_space<vmem>>, vector<8x32xf32>,
    %c0_16 = arith.constant 0 : index
    %c0_17 = arith.constant 0 : index
    %21 = vector.load %arg5[%c0_16, %c0_17] : memref<8x16xbf16, #tpu.memory_space<vmem>>, vector<8x1xbf16>
    %22 = arith.extf %21 : vector<8x1xbf16> to vector<8x1xf32>
    %c0_18 = arith.constant 0 : index
    %c121 = arith.constant 121 : index
    %23 = vector.load %arg21[%c0_18, %c121] : memref<8x176xf32, #tpu.memory_space<vmem>>, vector<8x32xf32>
    %24 = vector.broadcast %22 : vector<8x1xf32> to vector<8x32xf32>
    %25 = arith.mulf %24, %23 : vector<8x32xf32>
    %c0_19 = arith.constant 0 : index
    %c1 = arith.constant 1 : index
    %26 = vector.load %arg5[%c0_19, %c1] : memref<8x16xbf16, #tpu.memory_space<vmem>>, vector<8x1xbf16>
    %27 = arith.extf %26 : vector<8x1xbf16> to vector<8x1xf32>
    %c0_20 = arith.constant 0 : index
    %c122 = arith.constant 122 : index
    %28 = vector.load %arg21[%c0_20, %c122] : memref<8x176xf32, #tpu.memory_space<vmem>>, vector<8x32xf32>
    %29 = vector.broadcast %27 : vector<8x1xf32> to vector<8x32xf32>
    %30 = arith.mulf %29, %28 : vector<8x32xf32>
    %31 = arith.addf %25, %30 : vector<8x32xf32>
    %c0_21 = arith.constant 0 : index
    %c2 = arith.constant 2 : index
    %32 = vector.load %arg5[%c0_21, %c2] : memref<8x16xbf16, #tpu.memory_space<vmem>>, vector<8x1xbf16>
    %33 = arith.extf %32 : vector<8x1xbf16> to vector<8x1xf32>
    %c0_22 = arith.constant 0 : index
    %c123 = arith.constant 123 : index
    %34 = vector.load %arg21[%c0_22, %c123] : memref<8x176xf32, #tpu.memory_space<vmem>>, vector<8x32xf32>
    %35 = vector.broadcast %33 : vector<8x1xf32> to vector<8x32xf32>
    %36 = arith.mulf %35, %34 : vector<8x32xf32>
    %37 = arith.addf %31, %36 : vector<8x32xf32>
    %c0_23 = arith.constant 0 : index
    %c3 = arith.constant 3 : index
    %38 = vector.load %arg5[%c0_23, %c3] : memref<8x16xbf16, #tpu.memory_space<vmem>>, vector<8x1xbf16>
    %39 = arith.extf %38 : vector<8x1xbf16> to vector<8x1xf32>
    %c0_24 = arith.constant 0 : index
    %c124 = arith.constant 124 : index
    %40 = vector.load %arg21[%c0_24, %c124] : memref<8x176xf32, #tpu.memory_space<vmem>>, vector<8x32xf32>
    %41 = vector.broadcast %39 : vector<8x1xf32> to vector<8x32xf32>
    %42 = arith.mulf %41, %40 : vector<8x32xf32>
    %43 = arith.addf %37, %42 : vector<8x32xf32>
    %c0_25 = arith.constant 0 : index
    %c4 = arith.constant 4 : index
    %44 = vector.load %arg5[%c0_25, %c4] : memref<8x16xbf16, #tpu.memory_space<vmem>>, vector<8x1xbf16>
    %45 = arith.extf %44 : vector<8x1xbf16> to vector<8x1xf32>
    %c0_26 = arith.constant 0 : index
    %c125 = arith.constant 125 : index
    %46 = vector.load %arg21[%c0_26, %c125] : memref<8x176xf32, #tpu.memory_space<vmem>>, vector<8x32xf32>
    %47 = vector.broadcast %45 : vector<8x1xf32> to vector<8x32xf32>
    %48 = arith.mulf %47, %46 : vector<8x32xf32>
    %49 = arith.addf %43, %48 : vector<8x32xf32>
    %c0_27 = arith.constant 0 : index
    %c5 = arith.constant 5 : index
    %50 = vector.load %arg5[%c0_27, %c5] : memref<8x16xbf16, #tpu.memory_space<vmem>>, vector<8x1xbf16>
    %51 = arith.extf %50 : vector<8x1xbf16> to vector<8x1xf32>
    %c0_28 = arith.constant 0 : index
    %c126 = arith.constant 126 : index
    %52 = vector.load %arg21[%c0_28, %c126] : memref<8x176xf32, #tpu.memory_space<vmem>>, vector<8x32xf32>
    %53 = vector.broadcast %51 : vector<8x1xf32> to vector<8x32xf32>
    %54 = arith.mulf %53, %52 : vector<8x32xf32>
    %55 = arith.addf %49, %54 : vector<8x32xf32>
    %c0_29 = arith.constant 0 : index
    %c6 = arith.constant 6 : index
    %56 = vector.load %arg5[%c0_29, %c6] : memref<8x16xbf16, #tpu.memory_space<vmem>>, vector<8x1xbf16>
    %57 = arith.extf %56 : vector<8x1xbf16> to vector<8x1xf32>
    %c0_30 = arith.constant 0 : index
    %c127 = arith.constant 127 : index
    %58 = vector.load %arg21[%c0_30, %c127] : memref<8x176xf32, #tpu.memory_space<vmem>>, vector<8x32xf32>
    %59 = vector.broadcast %57 : vector<8x1xf32> to vector<8x32xf32>
    %60 = arith.mulf %59, %58 : vector<8x32xf32>
    %61 = arith.addf %55, %60 : vector<8x32xf32>
    %c0_31 = arith.constant 0 : index
    %c7 = arith.constant 7 : index
    %62 = vector.load %arg5[%c0_31, %c7] : memref<8x16xbf16, #tpu.memory_space<vmem>>, vector<8x1xbf16>
    %63 = arith.extf %62 : vector<8x1xbf16> to vector<8x1xf32>
    %c0_32 = arith.constant 0 : index
    %c128_33 = arith.constant 128 : index
    %64 = vector.load %arg21[%c0_32, %c128_33] : memref<8x176xf32, #tpu.memory_space<vmem>>, vector<8x32xf32>
    %65 = vector.broadcast %63 : vector<8x1xf32> to vector<8x32xf32>
    %66 = arith.mulf %65, %64 : vector<8x32xf32>
    %67 = arith.addf %61, %66 : vector<8x32xf32>
    %c0_34 = arith.constant 0 : index
    %c8 = arith.constant 8 : index
    %68 = vector.load %arg5[%c0_34, %c8] : memref<8x16xbf16, #tpu.memory_space<vmem>>, vector<8x1xbf16>
    %69 = arith.extf %68 : vector<8x1xbf16> to vector<8x1xf32>
    %c0_35 = arith.constant 0 : index
    %c129 = arith.constant 129 : index
    %70 = vector.load %arg21[%c0_35, %c129] : memref<8x176xf32, #tpu.memory_space<vmem>>, vector<8x32xf32>
    %71 = vector.broadcast %69 : vector<8x1xf32> to vector<8x32xf32>
    %72 = arith.mulf %71, %70 : vector<8x32xf32>
    %73 = arith.addf %67, %72 : vector<8x32xf32>
    %c0_36 = arith.constant 0 : index
    %c9 = arith.constant 9 : index
    %74 = vector.load %arg5[%c0_36, %c9] : memref<8x16xbf16, #tpu.memory_space<vmem>>, vector<8x1xbf16>
    %75 = arith.extf %74 : vector<8x1xbf16> to vector<8x1xf32>
    %c0_37 = arith.constant 0 : index
    %c130 = arith.constant 130 : index
    %76 = vector.load %arg21[%c0_37, %c130] : memref<8x176xf32, #tpu.memory_space<vmem>>, vector<8x32xf32>
    %77 = vector.broadcast %75 : vector<8x1xf32> to vector<8x32xf32>
    %78 = arith.mulf %77, %76 : vector<8x32xf32>
    %79 = arith.addf %73, %78 : vector<8x32xf32>
    %c0_38 = arith.constant 0 : index
    %c10 = arith.constant 10 : index
    %80 = vector.load %arg5[%c0_38, %c10] : memref<8x16xbf16, #tpu.memory_space<vmem>>, vector<8x1xbf16>
    %81 = arith.extf %80 : vector<8x1xbf16> to vector<8x1xf32>
    %c0_39 = arith.constant 0 : index
    %c131 = arith.constant 131 : index
    %82 = vector.load %arg21[%c0_39, %c131] : memref<8x176xf32, #tpu.memory_space<vmem>>, vector<8x32xf32>
    %83 = vector.broadcast %81 : vector<8x1xf32> to vector<8x32xf32>
    %84 = arith.mulf %83, %82 : vector<8x32xf32>
    %85 = arith.addf %79, %84 : vector<8x32xf32>
    %c0_40 = arith.constant 0 : index
    %c11 = arith.constant 11 : index
    %86 = vector.load %arg5[%c0_40, %c11] : memref<8x16xbf16, #tpu.memory_space<vmem>>, vector<8x1xbf16>
    %87 = arith.extf %86 : vector<8x1xbf16> to vector<8x1xf32>
    %c0_41 = arith.constant 0 : index
    %c132 = arith.constant 132 : index
    %88 = vector.load %arg21[%c0_41, %c132] : memref<8x176xf32, #tpu.memory_space<vmem>>, vector<8x32xf32>
    %89 = vector.broadcast %87 : vector<8x1xf32> to vector<8x32xf32>
    %90 = arith.mulf %89, %88 : vector<8x32xf32>
    %91 = arith.addf %85, %90 : vector<8x32xf32>
    %c0_42 = arith.constant 0 : index
    %c12 = arith.constant 12 : index
    %92 = vector.load %arg5[%c0_42, %c12] : memref<8x16xbf16, #tpu.memory_space<vmem>>, vector<8x1xbf16>
    %93 = arith.extf %92 : vector<8x1xbf16> to vector<8x1xf32>
    %c0_43 = arith.constant 0 : index
    %c133 = arith.constant 133 : index
    %94 = vector.load %arg21[%c0_43, %c133] : memref<8x176xf32, #tpu.memory_space<vmem>>, vector<8x32xf32>
    %95 = vector.broadcast %93 : vector<8x1xf32> to vector<8x32xf32>
    %96 = arith.mulf %95, %94 : vector<8x32xf32>
    %97 = arith.addf %91, %96 : vector<8x32xf32>
    %c0_44 = arith.constant 0 : index
    %c13 = arith.constant 13 : index
    %98 = vector.load %arg5[%c0_44, %c13] : memref<8x16xbf16, #tpu.memory_space<vmem>>, vector<8x1xbf16>
    %99 = arith.extf %98 : vector<8x1xbf16> to vector<8x1xf32>
    %c0_45 = arith.constant 0 : index
    %c134 = arith.constant 134 : index
    %100 = vector.load %arg21[%c0_45, %c134] : memref<8x176xf32, #tpu.memory_space<vmem>>, vector<8x32xf32>
    %101 = vector.broadcast %99 : vector<8x1xf32> to vector<8x32xf32>
    %102 = arith.mulf %101, %100 : vector<8x32xf32>
    %103 = arith.addf %97, %102 : vector<8x32xf32>
    %c0_46 = arith.constant 0 : index
    %c14 = arith.constant 14 : index
    %104 = vector.load %arg5[%c0_46, %c14] : memref<8x16xbf16, #tpu.memory_space<vmem>>, vector<8x1xbf16>
    %105 = arith.extf %104 : vector<8x1xbf16> to vector<8x1xf32>
    %c0_47 = arith.constant 0 : index
    %c135 = arith.constant 135 : index
    %106 = vector.load %arg21[%c0_47, %c135] : memref<8x176xf32, #tpu.memory_space<vmem>>, vector<8x32xf32>
    %107 = vector.broadcast %105 : vector<8x1xf32> to vector<8x32xf32>
    %108 = arith.mulf %107, %106 : vector<8x32xf32>
    %109 = arith.addf %103, %108 : vector<8x32xf32>
    %c0_48 = arith.constant 0 : index
    %c15 = arith.constant 15 : index
    %110 = vector.load %arg5[%c0_48, %c15] : memref<8x16xbf16, #tpu.memory_space<vmem>>, vector<8x1xbf16>
    %111 = arith.extf %110 : vector<8x1xbf16> to vector<8x1xf32>
    %c0_49 = arith.constant 0 : index
    %c136 = arith.constant 136 : index
    %112 = vector.load %arg21[%c0_49, %c136] : memref<8x176xf32, #tpu.memory_space<vmem>>, vector<8x32xf32>
    %113 = vector.broadcast %111 : vector<8x1xf32> to vector<8x32xf32>
    %114 = arith.mulf %113, %112 : vector<8x32xf32>
    %115 = arith.addf %109, %114 : vector<8x32xf32>
    %c0_50 = arith.constant 0 : index
    %c0_51 = arith.constant 0 : index
    %116 = vector.load %arg6[%c0_50, %c0_51] : memref<8x8xbf16, #tpu.memory_space<vmem>>, vector<8x8xbf16>
    %117 = arith.truncf %115 : vector<8x32xf32> to vector<8x32xbf16>
    %cst_52 = arith.constant dense<0.000000e+00> : vector<8x32xf32>
    %118 = tpu.matmul %116, %117, %cst_52 {dimension_numbers = #tpu.dot_dimension_numbers<[1], [0], [0], [1], [0, 0, 1, 1], [], []>} : vector<8x8xbf16>, vector<8x32xbf16>, vector<8x32xf32> -> vector<8x32xf32>
    %c0_53 = arith.constant 0 : index
    %c0_54 = arith.constant 0 : index
    %119 = vector.load %arg7[%c0_53, %c0_54] : memref<8x1xf32, #tpu.memory_space<vmem>>, vector<8x1xf32>
    %120 = vector.broadcast %119 : vector<8x1xf32> to vector<8x32xf32>
    %121 = arith.addf %118, %120 : vector<8x32xf32>
    %cst_55 = arith.constant 0.000000e+00 : f32
    %122 = vector.broadcast %cst_55 : f32 to vector<8x32xf32>
    %123 = arith.cmpf ogt, %121, %122 : vector<8x32xf32>
    %cst_56 = arith.constant 0.000000e+00 : f32
    %124 = vector.broadcast %cst_56 : f32 to vector<8x32xf32>
    %125 = arith.minimumf %121, %124 : vector<8x32xf32>
    %126 = math.exp %125 : vector<8x32xf32>
    %cst_57 = arith.constant 1.000000e+00 : f32
    %127 = vector.broadcast %cst_57 : f32 to vector<8x32xf32>
    %128 = arith.subf %126, %127 : vector<8x32xf32>
    %129 = arith.select %123, %121, %128 : vector<8x32xi1>, vector<8x32xf32>
    %130 = arith.truncf %129 : vector<8x32xf32> to vector<8x32xbf16>
    %c0_58 = arith.constant 0 : index
    %c0_59 = arith.constant 0 : index
    %131 = vector.load %arg8[%c0_58, %c0_59] : memref<32x8xbf16, #tpu.memory_space<vmem>>, vector<32x8xbf16>
    %cst_60 = arith.constant dense<0.000000e+00> : vector<8x8xf32>
    %132 = tpu.matmul %130, %131, %cst_60 {dimension_numbers = #tpu.dot_dimension_numbers<[1], [0], [0], [1], [0, 0, 1, 1], [], []>} : vector<8x32xbf16>, vector<32x8xbf16>, vector<8x8xf32> -> vector<8x8xf32>
    %cst_61 = arith.constant 0.000000e+00 : f32
    %133 = vector.broadcast %cst_61 : f32 to vector<8x144xf32>
    %c0_62 = arith.constant 0 : index
    %c0_63 = arith.constant 0 : index
    %134 = vector.load %arg22[%c0_62, %c0_63] : memref<8x144xf32, #tpu.memory_space<vmem>>, vector<8x144xf32>
    tpu.vector_store %arg22[%c0_62, %c0_63], %133 {strides = array<i32>} : memref<8x144xf32, #tpu.memory_space<vmem>>, vector<8x144xf32>,
    %c0_64 = arith.constant 0 : index
    %c128_65 = arith.constant 128 : index
    %135 = vector.load %arg22[%c0_64, %c128_65] : memref<8x144xf32, #tpu.memory_space<vmem>>, vector<8x8xf32>
    tpu.vector_store %arg22[%c0_64, %c128_65], %132 {strides = array<i32>} : memref<8x144xf32, #tpu.memory_space<vmem>>, vector<8x8xf32>,
    %c0_66 = arith.constant 0 : index
    %c125_67 = arith.constant 125 : index
    %136 = vector.load %arg22[%c0_66, %c125_67] : memref<8x144xf32, #tpu.memory_space<vmem>>, vector<8x8xf32>
    %c0_68 = arith.constant 0 : index
    %c0_69 = arith.constant 0 : index
    %137 = vector.load %arg23[%c0_68, %c0_69] : memref<32x8xf32, #tpu.memory_space<vmem>>, vector<8x8xf32>
    tpu.vector_store %arg23[%c0_68, %c0_69], %136 {strides = array<i32>} : memref<32x8xf32, #tpu.memory_space<vmem>>, vector<8x8xf32>,
    %c0_70 = arith.constant 0 : index
    %c126_71 = arith.constant 126 : index
    %138 = vector.load %arg22[%c0_70, %c126_71] : memref<8x144xf32, #tpu.memory_space<vmem>>, vector<8x8xf32>
    %c8_72 = arith.constant 8 : index
    %c0_73 = arith.constant 0 : index
    %139 = vector.load %arg23[%c8_72, %c0_73] : memref<32x8xf32, #tpu.memory_space<vmem>>, vector<8x8xf32>
    tpu.vector_store %arg23[%c8_72, %c0_73], %138 {strides = array<i32>} : memref<32x8xf32, #tpu.memory_space<vmem>>, vector<8x8xf32>,
    %c0_74 = arith.constant 0 : index
    %c127_75 = arith.constant 127 : index
    %140 = vector.load %arg22[%c0_74, %c127_75] : memref<8x144xf32, #tpu.memory_space<vmem>>, vector<8x8xf32>
    %c16 = arith.constant 16 : index
    %c0_76 = arith.constant 0 : index
    %141 = vector.load %arg23[%c16, %c0_76] : memref<32x8xf32, #tpu.memory_space<vmem>>, vector<8x8xf32>
    tpu.vector_store %arg23[%c16, %c0_76], %140 {strides = array<i32>} : memref<32x8xf32, #tpu.memory_space<vmem>>, vector<8x8xf32>,
    %c0_77 = arith.constant 0 : index
    %c128_78 = arith.constant 128 : index
    %142 = vector.load %arg22[%c0_77, %c128_78] : memref<8x144xf32, #tpu.memory_space<vmem>>, vector<8x8xf32>
    %c24 = arith.constant 24 : index
    %c0_79 = arith.constant 0 : index
    %143 = vector.load %arg23[%c24, %c0_79] : memref<32x8xf32, #tpu.memory_space<vmem>>, vector<8x8xf32>
    tpu.vector_store %arg23[%c24, %c0_79], %142 {strides = array<i32>} : memref<32x8xf32, #tpu.memory_space<vmem>>, vector<8x8xf32>,
    %c0_80 = arith.constant 0 : index
    %c0_81 = arith.constant 0 : index
    %144 = vector.load %arg9[%c0_80, %c0_81] : memref<8x32xbf16, #tpu.memory_space<vmem>>, vector<8x32xbf16>
    %c0_82 = arith.constant 0 : index
    %c0_83 = arith.constant 0 : index
    %145 = vector.load %arg23[%c0_82, %c0_83] : memref<32x8xf32, #tpu.memory_space<vmem>>, vector<32x8xf32>
    %cst_84 = arith.constant dense<0.000000e+00> : vector<8x8xf32>
    %146 = tpu.matmul %144, %145, %cst_84 {dimension_numbers = #tpu.dot_dimension_numbers<[1], [0], [0], [1], [0, 0, 1, 1], [], []>} : vector<8x32xbf16>, vector<32x8xf32>, vector<8x8xf32> -> vector<8x8xf32>
    %c0_85 = arith.constant 0 : index
    %c0_86 = arith.constant 0 : index
    %147 = vector.load %arg10[%c0_85, %c0_86] : memref<8x1xf32, #tpu.memory_space<vmem>>, vector<8x1xf32>
    %148 = vector.broadcast %147 : vector<8x1xf32> to vector<8x8xf32>
    %149 = arith.addf %146, %148 : vector<8x8xf32>
    %cst_87 = arith.constant 0.000000e+00 : f32
    %150 = vector.broadcast %cst_87 : f32 to vector<8x8xf32>
    %151 = arith.cmpf ogt, %149, %150 : vector<8x8xf32>
    %cst_88 = arith.constant 0.000000e+00 : f32
    %152 = vector.broadcast %cst_88 : f32 to vector<8x8xf32>
    %153 = arith.minimumf %149, %152 : vector<8x8xf32>
    %154 = math.exp %153 : vector<8x8xf32>
    %cst_89 = arith.constant 1.000000e+00 : f32
    %155 = vector.broadcast %cst_89 : f32 to vector<8x8xf32>
    %156 = arith.subf %154, %155 : vector<8x8xf32>
    %157 = arith.select %151, %149, %156 : vector<8x8xi1>, vector<8x8xf32>
    %cst_90 = arith.constant 0.000000e+00 : f32
    %158 = vector.broadcast %cst_90 : f32 to vector<8x144xf32>
    %c0_91 = arith.constant 0 : index
    %c0_92 = arith.constant 0 : index
    %159 = vector.load %arg22[%c0_91, %c0_92] : memref<8x144xf32, #tpu.memory_space<vmem>>, vector<8x144xf32>
    tpu.vector_store %arg22[%c0_91, %c0_92], %158 {strides = array<i32>} : memref<8x144xf32, #tpu.memory_space<vmem>>, vector<8x144xf32>,
    %c0_93 = arith.constant 0 : index
    %c128_94 = arith.constant 128 : index
    %160 = vector.load %arg22[%c0_93, %c128_94] : memref<8x144xf32, #tpu.memory_space<vmem>>, vector<8x8xf32>
    tpu.vector_store %arg22[%c0_93, %c128_94], %157 {strides = array<i32>} : memref<8x144xf32, #tpu.memory_space<vmem>>, vector<8x8xf32>,
    %c0_95 = arith.constant 0 : index
    %c125_96 = arith.constant 125 : index
    %161 = vector.load %arg22[%c0_95, %c125_96] : memref<8x144xf32, #tpu.memory_space<vmem>>, vector<8x8xf32>
    %c0_97 = arith.constant 0 : index
    %c0_98 = arith.constant 0 : index
    %162 = vector.load %arg23[%c0_97, %c0_98] : memref<32x8xf32, #tpu.memory_space<vmem>>, vector<8x8xf32>
    tpu.vector_store %arg23[%c0_97, %c0_98], %161 {strides = array<i32>} : memref<32x8xf32, #tpu.memory_space<vmem>>, vector<8x8xf32>,
    %c0_99 = arith.constant 0 : index
    %c126_100 = arith.constant 126 : index
    %163 = vector.load %arg22[%c0_99, %c126_100] : memref<8x144xf32, #tpu.memory_space<vmem>>, vector<8x8xf32>
    %c8_101 = arith.constant 8 : index
    %c0_102 = arith.constant 0 : index
    %164 = vector.load %arg23[%c8_101, %c0_102] : memref<32x8xf32, #tpu.memory_space<vmem>>, vector<8x8xf32>
    tpu.vector_store %arg23[%c8_101, %c0_102], %163 {strides = array<i32>} : memref<32x8xf32, #tpu.memory_space<vmem>>, vector<8x8xf32>,
    %c0_103 = arith.constant 0 : index
    %c127_104 = arith.constant 127 : index
    %165 = vector.load %arg22[%c0_103, %c127_104] : memref<8x144xf32, #tpu.memory_space<vmem>>, vector<8x8xf32>
    %c16_105 = arith.constant 16 : index
    %c0_106 = arith.constant 0 : index
    %166 = vector.load %arg23[%c16_105, %c0_106] : memref<32x8xf32, #tpu.memory_space<vmem>>, vector<8x8xf32>
    tpu.vector_store %arg23[%c16_105, %c0_106], %165 {strides = array<i32>} : memref<32x8xf32, #tpu.memory_space<vmem>>, vector<8x8xf32>,
    %c0_107 = arith.constant 0 : index
    %c128_108 = arith.constant 128 : index
    %167 = vector.load %arg22[%c0_107, %c128_108] : memref<8x144xf32, #tpu.memory_space<vmem>>, vector<8x8xf32>
    %c24_109 = arith.constant 24 : index
    %c0_110 = arith.constant 0 : index
    %168 = vector.load %arg23[%c24_109, %c0_110] : memref<32x8xf32, #tpu.memory_space<vmem>>, vector<8x8xf32>
    tpu.vector_store %arg23[%c24_109, %c0_110], %167 {strides = array<i32>} : memref<32x8xf32, #tpu.memory_space<vmem>>, vector<8x8xf32>,
    %c0_111 = arith.constant 0 : index
    %c0_112 = arith.constant 0 : index
    %169 = vector.load %arg11[%c0_111, %c0_112] : memref<8x32xbf16, #tpu.memory_space<vmem>>, vector<8x32xbf16>
    %c0_113 = arith.constant 0 : index
    %c0_114 = arith.constant 0 : index
    %170 = vector.load %arg23[%c0_113, %c0_114] : memref<32x8xf32, #tpu.memory_space<vmem>>, vector<32x8xf32>
    %cst_115 = arith.constant dense<0.000000e+00> : vector<8x8xf32>
    %171 = tpu.matmul %169, %170, %cst_115 {dimension_numbers = #tpu.dot_dimension_numbers<[1], [0], [0], [1], [0, 0, 1, 1], [], []>} : vector<8x32xbf16>, vector<32x8xf32>, vector<8x8xf32> -> vector<8x8xf32>
    %c0_116 = arith.constant 0 : index
    %c0_117 = arith.constant 0 : index
    %172 = vector.load %arg12[%c0_116, %c0_117] : memref<8x1xf32, #tpu.memory_space<vmem>>, vector<8x1xf32>
    %173 = vector.broadcast %172 : vector<8x1xf32> to vector<8x8xf32>
    %174 = arith.addf %171, %173 : vector<8x8xf32>
    %cst_118 = arith.constant 0.000000e+00 : f32
    %175 = vector.broadcast %cst_118 : f32 to vector<8x8xf32>
    %176 = arith.cmpf ogt, %174, %175 : vector<8x8xf32>
    %cst_119 = arith.constant 0.000000e+00 : f32
    %177 = vector.broadcast %cst_119 : f32 to vector<8x8xf32>
    %178 = arith.minimumf %174, %177 : vector<8x8xf32>
    %179 = math.exp %178 : vector<8x8xf32>
    %cst_120 = arith.constant 1.000000e+00 : f32
    %180 = vector.broadcast %cst_120 : f32 to vector<8x8xf32>
    %181 = arith.subf %179, %180 : vector<8x8xf32>
    %182 = arith.select %176, %174, %181 : vector<8x8xi1>, vector<8x8xf32>
    %c0_121 = arith.constant 0 : index
    %c0_122 = arith.constant 0 : index
    %183 = vector.load %arg13[%c0_121, %c0_122] : memref<8x8xbf16, #tpu.memory_space<vmem>>, vector<8x8xbf16>
    %184 = arith.truncf %132 : vector<8x8xf32> to vector<8x8xbf16>
    %cst_123 = arith.constant dense<0.000000e+00> : vector<8x8xf32>
    %185 = tpu.matmul %183, %184, %cst_123 {dimension_numbers = #tpu.dot_dimension_numbers<[1], [0], [0], [1], [0, 0, 1, 1], [], []>} : vector<8x8xbf16>, vector<8x8xbf16>, vector<8x8xf32> -> vector<8x8xf32>
    %186 = arith.addf %182, %185 : vector<8x8xf32>
    %cst_124 = arith.constant 0.000000e+00 : f32
    %187 = vector.broadcast %cst_124 : f32 to vector<8x8xf32>
    %188 = arith.cmpf ogt, %186, %187 : vector<8x8xf32>
    %cst_125 = arith.constant 0.000000e+00 : f32
    %189 = vector.broadcast %cst_125 : f32 to vector<8x8xf32>
    %190 = arith.minimumf %186, %189 : vector<8x8xf32>
    %191 = math.exp %190 : vector<8x8xf32>
    %cst_126 = arith.constant 1.000000e+00 : f32
    %192 = vector.broadcast %cst_126 : f32 to vector<8x8xf32>
    %193 = arith.subf %191, %192 : vector<8x8xf32>
    %194 = arith.select %188, %186, %193 : vector<8x8xi1>, vector<8x8xf32>
    %cst_127 = arith.constant 0.000000e+00 : f32
    %195 = vector.broadcast %cst_127 : f32 to vector<8x144xf32>
    %c0_128 = arith.constant 0 : index
    %c0_129 = arith.constant 0 : index
    %196 = vector.load %arg22[%c0_128, %c0_129] : memref<8x144xf32, #tpu.memory_space<vmem>>, vector<8x144xf32>
    tpu.vector_store %arg22[%c0_128, %c0_129], %195 {strides = array<i32>} : memref<8x144xf32, #tpu.memory_space<vmem>>, vector<8x144xf32>,
    %c0_130 = arith.constant 0 : index
    %c128_131 = arith.constant 128 : index
    %197 = vector.load %arg22[%c0_130, %c128_131] : memref<8x144xf32, #tpu.memory_space<vmem>>, vector<8x8xf32>
    tpu.vector_store %arg22[%c0_130, %c128_131], %194 {strides = array<i32>} : memref<8x144xf32, #tpu.memory_space<vmem>>, vector<8x8xf32>,
    %c0_132 = arith.constant 0 : index
    %c122_133 = arith.constant 122 : index
    %198 = vector.load %arg22[%c0_132, %c122_133] : memref<8x144xf32, #tpu.memory_space<vmem>>, vector<8x8xf32>
    %c0_134 = arith.constant 0 : index
    %c0_135 = arith.constant 0 : index
    %199 = vector.load %arg23[%c0_134, %c0_135] : memref<32x8xf32, #tpu.memory_space<vmem>>, vector<8x8xf32>
    tpu.vector_store %arg23[%c0_134, %c0_135], %198 {strides = array<i32>} : memref<32x8xf32, #tpu.memory_space<vmem>>, vector<8x8xf32>,
    %c0_136 = arith.constant 0 : index
    %c124_137 = arith.constant 124 : index
    %200 = vector.load %arg22[%c0_136, %c124_137] : memref<8x144xf32, #tpu.memory_space<vmem>>, vector<8x8xf32>
    %c8_138 = arith.constant 8 : index
    %c0_139 = arith.constant 0 : index
    %201 = vector.load %arg23[%c8_138, %c0_139] : memref<32x8xf32, #tpu.memory_space<vmem>>, vector<8x8xf32>
    tpu.vector_store %arg23[%c8_138, %c0_139], %200 {strides = array<i32>} : memref<32x8xf32, #tpu.memory_space<vmem>>, vector<8x8xf32>,
    %c0_140 = arith.constant 0 : index
    %c126_141 = arith.constant 126 : index
    %202 = vector.load %arg22[%c0_140, %c126_141] : memref<8x144xf32, #tpu.memory_space<vmem>>, vector<8x8xf32>
    %c16_142 = arith.constant 16 : index
    %c0_143 = arith.constant 0 : index
    %203 = vector.load %arg23[%c16_142, %c0_143] : memref<32x8xf32, #tpu.memory_space<vmem>>, vector<8x8xf32>
    tpu.vector_store %arg23[%c16_142, %c0_143], %202 {strides = array<i32>} : memref<32x8xf32, #tpu.memory_space<vmem>>, vector<8x8xf32>,
    %c0_144 = arith.constant 0 : index
    %c128_145 = arith.constant 128 : index
    %204 = vector.load %arg22[%c0_144, %c128_145] : memref<8x144xf32, #tpu.memory_space<vmem>>, vector<8x8xf32>
    %c24_146 = arith.constant 24 : index
    %c0_147 = arith.constant 0 : index
    %205 = vector.load %arg23[%c24_146, %c0_147] : memref<32x8xf32, #tpu.memory_space<vmem>>, vector<8x8xf32>
    tpu.vector_store %arg23[%c24_146, %c0_147], %204 {strides = array<i32>} : memref<32x8xf32, #tpu.memory_space<vmem>>, vector<8x8xf32>,
    %c0_148 = arith.constant 0 : index
    %c0_149 = arith.constant 0 : index
    %206 = vector.load %arg14[%c0_148, %c0_149] : memref<8x32xbf16, #tpu.memory_space<vmem>>, vector<8x32xbf16>
    %c0_150 = arith.constant 0 : index
    %c0_151 = arith.constant 0 : index
    %207 = vector.load %arg23[%c0_150, %c0_151] : memref<32x8xf32, #tpu.memory_space<vmem>>, vector<32x8xf32>
    %cst_152 = arith.constant dense<0.000000e+00> : vector<8x8xf32>
    %208 = tpu.matmul %206, %207, %cst_152 {dimension_numbers = #tpu.dot_dimension_numbers<[1], [0], [0], [1], [0, 0, 1, 1], [], []>} : vector<8x32xbf16>, vector<32x8xf32>, vector<8x8xf32> -> vector<8x8xf32>
    %c0_153 = arith.constant 0 : index
    %c0_154 = arith.constant 0 : index
    %209 = vector.load %arg15[%c0_153, %c0_154] : memref<8x1xf32, #tpu.memory_space<vmem>>, vector<8x1xf32>
    %210 = vector.broadcast %209 : vector<8x1xf32> to vector<8x8xf32>
    %211 = arith.addf %208, %210 : vector<8x8xf32>
    %cst_155 = arith.constant 0.000000e+00 : f32
    %212 = vector.broadcast %cst_155 : f32 to vector<8x8xf32>
    %213 = arith.cmpf ogt, %211, %212 : vector<8x8xf32>
    %cst_156 = arith.constant 0.000000e+00 : f32
    %214 = vector.broadcast %cst_156 : f32 to vector<8x8xf32>
    %215 = arith.minimumf %211, %214 : vector<8x8xf32>
    %216 = math.exp %215 : vector<8x8xf32>
    %cst_157 = arith.constant 1.000000e+00 : f32
    %217 = vector.broadcast %cst_157 : f32 to vector<8x8xf32>
    %218 = arith.subf %216, %217 : vector<8x8xf32>
    %219 = arith.select %213, %211, %218 : vector<8x8xi1>, vector<8x8xf32>
    %cst_158 = arith.constant 0.000000e+00 : f32
    %220 = vector.broadcast %cst_158 : f32 to vector<8x144xf32>
    %c0_159 = arith.constant 0 : index
    %c0_160 = arith.constant 0 : index
    %221 = vector.load %arg22[%c0_159, %c0_160] : memref<8x144xf32, #tpu.memory_space<vmem>>, vector<8x144xf32>
    tpu.vector_store %arg22[%c0_159, %c0_160], %220 {strides = array<i32>} : memref<8x144xf32, #tpu.memory_space<vmem>>, vector<8x144xf32>,
    %c0_161 = arith.constant 0 : index
    %c128_162 = arith.constant 128 : index
    %222 = vector.load %arg22[%c0_161, %c128_162] : memref<8x144xf32, #tpu.memory_space<vmem>>, vector<8x8xf32>
    tpu.vector_store %arg22[%c0_161, %c128_162], %219 {strides = array<i32>} : memref<8x144xf32, #tpu.memory_space<vmem>>, vector<8x8xf32>,
    %c0_163 = arith.constant 0 : index
    %c122_164 = arith.constant 122 : index
    %223 = vector.load %arg22[%c0_163, %c122_164] : memref<8x144xf32, #tpu.memory_space<vmem>>, vector<8x8xf32>
    %c0_165 = arith.constant 0 : index
    %c0_166 = arith.constant 0 : index
    %224 = vector.load %arg23[%c0_165, %c0_166] : memref<32x8xf32, #tpu.memory_space<vmem>>, vector<8x8xf32>
    tpu.vector_store %arg23[%c0_165, %c0_166], %223 {strides = array<i32>} : memref<32x8xf32, #tpu.memory_space<vmem>>, vector<8x8xf32>,
    %c0_167 = arith.constant 0 : index
    %c124_168 = arith.constant 124 : index
    %225 = vector.load %arg22[%c0_167, %c124_168] : memref<8x144xf32, #tpu.memory_space<vmem>>, vector<8x8xf32>
    %c8_169 = arith.constant 8 : index
    %c0_170 = arith.constant 0 : index
    %226 = vector.load %arg23[%c8_169, %c0_170] : memref<32x8xf32, #tpu.memory_space<vmem>>, vector<8x8xf32>
    tpu.vector_store %arg23[%c8_169, %c0_170], %225 {strides = array<i32>} : memref<32x8xf32, #tpu.memory_space<vmem>>, vector<8x8xf32>,
    %c0_171 = arith.constant 0 : index
    %c126_172 = arith.constant 126 : index
    %227 = vector.load %arg22[%c0_171, %c126_172] : memref<8x144xf32, #tpu.memory_space<vmem>>, vector<8x8xf32>
    %c16_173 = arith.constant 16 : index
    %c0_174 = arith.constant 0 : index
    %228 = vector.load %arg23[%c16_173, %c0_174] : memref<32x8xf32, #tpu.memory_space<vmem>>, vector<8x8xf32>
    tpu.vector_store %arg23[%c16_173, %c0_174], %227 {strides = array<i32>} : memref<32x8xf32, #tpu.memory_space<vmem>>, vector<8x8xf32>,
    %c0_175 = arith.constant 0 : index
    %c128_176 = arith.constant 128 : index
    %229 = vector.load %arg22[%c0_175, %c128_176] : memref<8x144xf32, #tpu.memory_space<vmem>>, vector<8x8xf32>
    %c24_177 = arith.constant 24 : index
    %c0_178 = arith.constant 0 : index
    %230 = vector.load %arg23[%c24_177, %c0_178] : memref<32x8xf32, #tpu.memory_space<vmem>>, vector<8x8xf32>
    tpu.vector_store %arg23[%c24_177, %c0_178], %229 {strides = array<i32>} : memref<32x8xf32, #tpu.memory_space<vmem>>, vector<8x8xf32>,
    %c0_179 = arith.constant 0 : index
    %c0_180 = arith.constant 0 : index
    %231 = vector.load %arg16[%c0_179, %c0_180] : memref<8x32xbf16, #tpu.memory_space<vmem>>, vector<8x32xbf16>
    %c0_181 = arith.constant 0 : index
    %c0_182 = arith.constant 0 : index
    %232 = vector.load %arg23[%c0_181, %c0_182] : memref<32x8xf32, #tpu.memory_space<vmem>>, vector<32x8xf32>
    %cst_183 = arith.constant dense<0.000000e+00> : vector<8x8xf32>
    %233 = tpu.matmul %231, %232, %cst_183 {dimension_numbers = #tpu.dot_dimension_numbers<[1], [0], [0], [1], [0, 0, 1, 1], [], []>} : vector<8x32xbf16>, vector<32x8xf32>, vector<8x8xf32> -> vector<8x8xf32>
    %c0_184 = arith.constant 0 : index
    %c0_185 = arith.constant 0 : index
    %234 = vector.load %arg17[%c0_184, %c0_185] : memref<8x1xf32, #tpu.memory_space<vmem>>, vector<8x1xf32>
    %235 = vector.broadcast %234 : vector<8x1xf32> to vector<8x8xf32>
    %236 = arith.addf %233, %235 : vector<8x8xf32>
    %cst_186 = arith.constant 0.000000e+00 : f32
    %237 = vector.broadcast %cst_186 : f32 to vector<8x8xf32>
    %238 = arith.cmpf ogt, %236, %237 : vector<8x8xf32>
    %cst_187 = arith.constant 0.000000e+00 : f32
    %239 = vector.broadcast %cst_187 : f32 to vector<8x8xf32>
    %240 = arith.minimumf %236, %239 : vector<8x8xf32>
    %241 = math.exp %240 : vector<8x8xf32>
    %cst_188 = arith.constant 1.000000e+00 : f32
    %242 = vector.broadcast %cst_188 : f32 to vector<8x8xf32>
    %243 = arith.subf %241, %242 : vector<8x8xf32>
    %244 = arith.select %238, %236, %243 : vector<8x8xi1>, vector<8x8xf32>
    %245 = arith.addf %244, %194 : vector<8x8xf32>
    %cst_189 = arith.constant 0.000000e+00 : f32
    %246 = vector.broadcast %cst_189 : f32 to vector<8x8xf32>
    %247 = arith.cmpf ogt, %245, %246 : vector<8x8xf32>
    %cst_190 = arith.constant 0.000000e+00 : f32
    %248 = vector.broadcast %cst_190 : f32 to vector<8x8xf32>
    %249 = arith.minimumf %245, %248 : vector<8x8xf32>
    %250 = math.exp %249 : vector<8x8xf32>
    %cst_191 = arith.constant 1.000000e+00 : f32
    %251 = vector.broadcast %cst_191 : f32 to vector<8x8xf32>
    %252 = arith.subf %250, %251 : vector<8x8xf32>
    %253 = arith.select %247, %245, %252 : vector<8x8xi1>, vector<8x8xf32>
    %c0_192 = arith.constant 0 : index
    %c0_193 = arith.constant 0 : index
    %c0_194 = arith.constant 0 : index
    %254 = vector.load %arg18[%c0_192, %c0_193, %c0_194] : memref<4x8x8xbf16, #tpu.memory_space<vmem>>, vector<4x8x8xbf16>
    %255 = arith.extf %254 : vector<4x8x8xbf16> to vector<4x8x8xf32>
    %256 = vector.shape_cast %253 : vector<8x8xf32> to vector<1x8x8xf32>
    %257 = vector.broadcast %256 : vector<1x8x8xf32> to vector<4x8x8xf32>
    %258 = arith.mulf %255, %257 : vector<4x8x8xf32>
    %cst_195 = arith.constant dense<0.000000e+00> : vector<4x8xf32>
    %259 = vector.multi_reduction <add>, %258, %cst_195 [2] : vector<4x8x8xf32> to vector<4x8xf32>
    %cst_196 = arith.constant dense<0.000000e+00> : vector<4xf32>
    %260 = vector.multi_reduction <add>, %259, %cst_196 [1] : vector<4x8xf32> to vector<4xf32>
    %261 = vector.shape_cast %260 : vector<4xf32> to vector<4x1xf32>
    %c0_197 = arith.constant 0 : index
    %c0_198 = arith.constant 0 : index
    %262 = vector.load %arg19[%c0_197, %c0_198] : memref<4x1xf32, #tpu.memory_space<vmem>>, vector<4x1xf32>
    %263 = arith.addf %261, %262 : vector<4x1xf32>
    %264 = vector.shape_cast %263 : vector<4x1xf32> to vector<1x4x1xf32>
    %265 = vector.broadcast %264 : vector<1x4x1xf32> to vector<1x4x128xf32>
    %c0_199 = arith.constant 0 : index
    %c0_200 = arith.constant 0 : index
    %c0_201 = arith.constant 0 : index
    %266 = vector.load %arg20[%c0_199, %c0_200, %c0_201] : memref<1x4x128xf32, #tpu.memory_space<vmem>>, vector<1x4x128xf32>
    tpu.vector_store %arg20[%c0_199, %c0_200, %c0_201], %265 {strides = array<i32>} : memref<1x4x128xf32, #tpu.memory_space<vmem>>, vector<1x4x128xf32>,
    return
  }
  func.func @transform_0(%arg0: i32) -> (i32, i32, i32) {
    %c0_i32 = arith.constant 0 : i32
    %c0_i32_0 = arith.constant 0 : i32
    %c0_i32_1 = arith.constant 0 : i32
    return %arg0, %c0_i32, %c0_i32_0 : i32, i32, i32
  }
  func.func @transform_1(%arg0: i32) -> (i32, i32) {
    %c0_i32 = arith.constant 0 : i32
    %c0_i32_0 = arith.constant 0 : i32
    %c0_i32_1 = arith.constant 0 : i32
    return %c0_i32, %c0_i32_0 : i32, i32
  }
  func.func @transform_2(%arg0: i32) -> (i32, i32) {
    %c0_i32 = arith.constant 0 : i32
    %c0_i32_0 = arith.constant 0 : i32
    %c0_i32_1 = arith.constant 0 : i32
    return %c0_i32, %c0_i32_0 : i32, i32
  }
  func.func @transform_3(%arg0: i32) -> (i32, i32) {
    %c0_i32 = arith.constant 0 : i32
    %c0_i32_0 = arith.constant 0 : i32
    %c0_i32_1 = arith.constant 0 : i32
    return %c0_i32, %c0_i32_0 : i32, i32
  }
  func.func @transform_4(%arg0: i32) -> (i32, i32) {
    %c0_i32 = arith.constant 0 : i32
    %c0_i32_0 = arith.constant 0 : i32
    %c0_i32_1 = arith.constant 0 : i32
    return %c0_i32, %c0_i32_0 : i32, i32
  }
  func.func @transform_5(%arg0: i32) -> (i32, i32) {
    %c0_i32 = arith.constant 0 : i32
    %c0_i32_0 = arith.constant 0 : i32
    %c0_i32_1 = arith.constant 0 : i32
    return %c0_i32, %c0_i32_0 : i32, i32
  }
  func.func @transform_6(%arg0: i32) -> (i32, i32) {
    %c0_i32 = arith.constant 0 : i32
    %c0_i32_0 = arith.constant 0 : i32
    %c0_i32_1 = arith.constant 0 : i32
    return %c0_i32, %c0_i32_0 : i32, i32
  }
  func.func @transform_7(%arg0: i32) -> (i32, i32) {
    %c0_i32 = arith.constant 0 : i32
    %c0_i32_0 = arith.constant 0 : i32
    %c0_i32_1 = arith.constant 0 : i32
    return %c0_i32, %c0_i32_0 : i32, i32
  }
  func.func @transform_8(%arg0: i32) -> (i32, i32) {
    %c0_i32 = arith.constant 0 : i32
    %c0_i32_0 = arith.constant 0 : i32
    %c0_i32_1 = arith.constant 0 : i32
    return %c0_i32, %c0_i32_0 : i32, i32
  }
  func.func @transform_9(%arg0: i32) -> (i32, i32) {
    %c0_i32 = arith.constant 0 : i32
    %c0_i32_0 = arith.constant 0 : i32
    %c0_i32_1 = arith.constant 0 : i32
    return %c0_i32, %c0_i32_0 : i32, i32
  }
  func.func @transform_10(%arg0: i32) -> (i32, i32) {
    %c0_i32 = arith.constant 0 : i32
    %c0_i32_0 = arith.constant 0 : i32
    %c0_i32_1 = arith.constant 0 : i32
    return %c0_i32, %c0_i32_0 : i32, i32
  }
  func.func @transform_11(%arg0: i32) -> (i32, i32) {
    %c0_i32 = arith.constant 0 : i32
    %c0_i32_0 = arith.constant 0 : i32
    %c0_i32_1 = arith.constant 0 : i32
    return %c0_i32, %c0_i32_0 : i32, i32
  }
  func.func @transform_12(%arg0: i32) -> (i32, i32) {
    %c0_i32 = arith.constant 0 : i32
    %c0_i32_0 = arith.constant 0 : i32
    %c0_i32_1 = arith.constant 0 : i32
    return %c0_i32, %c0_i32_0 : i32, i32
  }
  func.func @transform_13(%arg0: i32) -> (i32, i32) {
    %c0_i32 = arith.constant 0 : i32
    %c0_i32_0 = arith.constant 0 : i32
    %c0_i32_1 = arith.constant 0 : i32
    return %c0_i32, %c0_i32_0 : i32, i32
  }
  func.func @transform_14(%arg0: i32) -> (i32, i32) {
    %c0_i32 = arith.constant 0 : i32
    %c0_i32_0 = arith.constant 0 : i32
    %c0_i32_1 = arith.constant 0 : i32
    return %c0_i32, %c0_i32_0 : i32, i32
  }
  func.func @transform_15(%arg0: i32) -> (i32, i32) {
    %c0_i32 = arith.constant 0 : i32
    %c0_i32_0 = arith.constant 0 : i32
    %c0_i32_1 = arith.constant 0 : i32
    return %c0_i32, %c0_i32_0 : i32, i32
  }
  func.func @transform_16(%arg0: i32) -> (i32, i32) {
    %c0_i32 = arith.constant 0 : i32
    %c0_i32_0 = arith.constant 0 : i32
    %c0_i32_1 = arith.constant 0 : i32
    return %c0_i32, %c0_i32_0 : i32, i32
  }
  func.func @transform_17(%arg0: i32) -> (i32, i32, i32) {
    %c0_i32 = arith.constant 0 : i32
    %c0_i32_0 = arith.constant 0 : i32
    %c0_i32_1 = arith.constant 0 : i32
    %c0_i32_2 = arith.constant 0 : i32
    return %c0_i32, %c0_i32_0, %c0_i32_1 : i32, i32, i32
  }
  func.func @transform_18(%arg0: i32) -> (i32, i32) {
    %c0_i32 = arith.constant 0 : i32
    %c0_i32_0 = arith.constant 0 : i32
    %c0_i32_1 = arith.constant 0 : i32
    return %c0_i32, %c0_i32_0 : i32, i32
  }
  func.func @transform_19(%arg0: i32) -> (i32, i32, i32) {
    %c0_i32 = arith.constant 0 : i32
    %c0_i32_0 = arith.constant 0 : i32
    %c0_i32_1 = arith.constant 0 : i32
    return %arg0, %c0_i32, %c0_i32_0 : i32, i32, i32
  }
}

</mosaic_0001>

<bundles_post_ra>
// kernel: eeg_tcnet_forward.1
= control target key start
LH: loop header
LB: loop body
LE: loop exit
PB: predicated region body
PF: predicated region fallthrough
CT: control target
= control target key end

     0   :  { %s2035_s0 = inlined_call_operand.vmem [shape: bf16[2,32,128], index: 0, kind: input, shape index: {}]   ;;  %s2036_s1 = inlined_call_operand.vmem [shape: bf16[8,32], index: 1, kind: input, shape index: {}]   ;;  %s2037_s2 = inlined_call_operand.vmem [shape: f32[8,1], index: 2, kind: input, shape index: {}]   ;;  %s2038_s3 = inlined_call_operand.vmem [shape: bf16[128,32], index: 3, kind: input, shape index: {}]   ;;  %s2039_s4 = inlined_call_operand.vmem [shape: bf16[8,16], index: 4, kind: input, shape index: {}]   ;;  %s2040_s5 = inlined_call_operand.vmem [shape: bf16[8,8], index: 5, kind: input, shape index: {}]   ;;  %s2041_s6 = inlined_call_operand.vmem [shape: f32[8,1], index: 6, kind: input, shape index: {}]   ;;  %s2042_s7 = inlined_call_operand.vmem [shape: bf16[32,8], index: 7, kind: input, shape index: {}]   ;;  %s2043_s8 = inlined_call_operand.vmem [shape: bf16[8,32], index: 8, kind: input, shape index: {}]   ;;  %s2044_s9 = inlined_call_operand.vmem [shape: f32[8,1], index: 9, kind: input, shape index: {}]   ;;  %s2045_s10 = inlined_call_operand.vmem [shape: bf16[8,32], index: 10, kind: input, shape index: {}]   ;;  %s2046_s11 = inlined_call_operand.vmem [shape: f32[8,1], index: 11, kind: input, shape index: {}]   ;;  %s2047_s12 = inlined_call_operand.vmem [shape: bf16[8,8], index: 12, kind: input, shape index: {}]   ;;  %s2048_s13 = inlined_call_operand.vmem [shape: bf16[8,32], index: 13, kind: input, shape index: {}]   ;;  %s2049_s14 = inlined_call_operand.vmem [shape: f32[8,1], index: 14, kind: input, shape index: {}]   ;;  %s2050_s15 = inlined_call_operand.vmem [shape: bf16[8,32], index: 15, kind: input, shape index: {}]   ;;  %s2051_s16 = inlined_call_operand.vmem [shape: f32[8,1], index: 16, kind: input, shape index: {}]   ;;  %s2052_s17 = inlined_call_operand.vmem [shape: bf16[4,8,8], index: 17, kind: input, shape index: {}]   ;;  %s2053_s18 = inlined_call_operand.vmem [shape: f32[4,1], index: 18, kind: input, shape index: {}]   ;;  %s2054_s19 = inlined_call_operand.vmem [shape: f32[2,4,128], index: 19, kind: output, shape index: {}]  }
   0x1   :  { %2056 = sst [smem:[#allocation5_spill]] %s2035_s0  ;;  %s1811_s0 = smov 0  }
   0x2   :  { %2057 = sst [smem:[#allocation6_spill]] %s2036_s1 }
   0x3   :  { %2058 = sst [smem:[#allocation7_spill]] %s2037_s2 }
   0x4   :  { %2059 = sst [smem:[#allocation8_spill]] %s2038_s3 }
   0x5 LB: > { %s1488_s30 = sadd.s32 4294967295, %s1671_s0   ;;  %p1492_p0 = scmp.ge.s32.totalorder %s1671_s0, 1  ;;  %s1671_s0 = sphi %s1811_s0, %s29_s0  }
   0x6   : > { %p537_p1 = scmp.lt.s32.totalorder %s1671_s0, 3 }
   0x8   : > { %p538_p2 = pnand %p1492_p0, %p537_p1 }
   0x9   : > { %p592_p3 = scmp.lt.s32.totalorder (!%p538_p2), %s1488_s30, 1  ;;  %s2060_s1 = sld [smem:[#allocation7_spill]] (!%p538_p2) }
   0xa   : > { %541 = sbr.rel (%p538_p2) target bundleno = 2371 (0x943), region = 96  ;;  %s2061_s25 = sld [smem:[#allocation8_spill]] (!%p538_p2) }
   0xb   : > { %s2062_s20 = sld [smem:[#allocation5_spill]] (!%p538_p2)  ;;  %s1687_s23 = smov (!%p538_p2), 126  }
   0xc   : > { %s2063_s26 = sld [smem:[#allocation6_spill]] (!%p538_p2)  ;;  %s1690_s24 = smov (!%p538_p2), 125  }
   0xd   : > { %s1691_s3 = smov (!%p538_p2), 123   ;;  %s1694_s28 = smov (!%p538_p2), 124  }
   0xe   : > { %s1696_s29 = smov (!%p538_p2), 119   ;;  %s1700_s22 = smov (!%p538_p2), 118  }
   0xf   : > { %v607_v0 = vld [vmem:[%s2060_s1] sm:$0xff]  ;;  %v1673_v1 = vmov 0   ;;  %s2065_s30 = smov (!%p592_p3, %s1488_s30), 1  ;;  %v1674_v4 = vmov 2   ;;  %vm625_vm0 = vcmask 261120   ;;  %v1675_v12 = vmov 3  }
  0x10   : > { %1630 = vset.pattern.permute.xlu0 %v1673_v1  ;;  %v730_v2 = vld [vmem:[%s2039_s4] sm:$0xf]  ;;  %v1572_v3 = vld [vmem:[%s2061_s25 + $0x38] sm:$0xff]  ;;  %1632 = vset.pattern.permute.xlu1 %v1674_v4  ;;  %v1571_v6 = vld [vmem:[%s2061_s25 + $0x30] sm:$0xff]  ;;  %s1562_s27 = sshll.u32 %s2065_s30, 4  ;;  %v1676_v13 = vmov 6  }
  0x11   : > { %610 = vperm.xlu0 %1630, %v607_v0   ;;  %v1831_v5 = vunpack.c.l.bf16 %v730_v2  ;;  %713 = vmatpush.bf16.msra.mxu1 %v1572_v3  ;;  %s596_s21 = scalar_lea.vmem %s2062_s20, %s1562_s27  ;;  %v1570_v8 = vld [vmem:[%s2061_s25 + $0x28] sm:$0xff]  ;;  %v1569_v10 = vld [vmem:[%s2061_s25 + $0x20] sm:$0xff]  ;;  %v1568_v14 = vld [vmem:[%s2061_s25 + $0x18] sm:$0xff]  ;;  %v1677_v17 = vmov 1   ;;  %v1678_v18 = vmov 4   ;;  %v1679_v19 = vmov 9  }
  0x12   : > { %v1564_v7 = vld [vmem:[%s596_s21 + $0x8] sm:$0xff]  ;;  %v1563_v9 = vld [vmem:[%s596_s21] sm:$0xff]  ;;  %v1567_v15 = vld [vmem:[%s2061_s25 + $0x10] sm:$0xff]  ;;  %1634 = vset.pattern.permute.xlu2 %v1678_v18  ;;  %v1680_v21 = vmov 11   ;;  %v1681_v22 = vmov 5   ;;  %v1682_v23 = vmov 8  }
  0x13   : > { %760 = vperm.xlu1 %1632, %v1831_v5   ;;  %635 = vmatpush.bf16.msra.mxu0 %v1564_v7  ;;  %v602_v11 = vld [vmem:[%s2063_s26] sm:$0xf]  ;;  %v1566_v16 = vld [vmem:[%s2061_s25 + $0x8] sm:$0xff]  ;;  %v1683_v24 = vmov 14   ;;  %v1684_v25 = vmov 7   ;;  %v1685_v27 = vmov 13  }
  0x14   : > { %796 = vperm.xlu2 %1634, %v1831_v5   ;;  %v1565_v20 = vld [vmem:[%s2061_s25] sm:$0xff]  ;;  %v1686_v32 = vmov 10   ;;  %v1688_v38 = vmov 12   ;;  %v1689_v41 = vmov 15   ;;  %s1692_s26 = smov 122   ;;  %s1693_s27 = smov 127  }
  0x15   : > { %714 = vmatpush.bf16.msra.mxu1 %v1571_v6  ;;  %vm727_vm2 = vcmask 392192   ;;  %v1695_v52 = vmov 0.0   ;;  %s1697_s20 = smov 121   ;;  %s1698_s21 = smov 120   ;;  %vm753_vm3 = vcmask 1039360   ;;  %vm771_vm4 = vcmask 1031168  }
  0x16   : > { %728 = vst.msk [vmem:[#allocation2 + $0x8] sm:$0xff] %vm727_vm2, %v1695_v52  ;;  %s1699_s1 = smov 116   ;;  %s1701_s2 = smov 117   ;;  %vm789_vm5 = vcmask 1022976   ;;  %vm807_vm6 = vcmask 1014784   ;;  %vm825_vm7 = vcmask 1006592  }
  0x17   : > { %636 = vmatpush.bf16.msra.mxu0 %v1563_v9  ;;  %vm843_vm8 = vcmask 998400   ;;  %vm963_vm9 = vcmask 56320   ;;  %vm969_vm10 = vcmask 1043456   ;;  %vm965_vm11 = vcmask 64512  }
  0x18   : > { %vm1026_vm13 = vcmask 130048   ;;  %vm1049_vm14 = vcmask 15360   ;;  %vm1061_vm15 = vcmask 7168  }
  0x19   : > { %715 = vmatpush.bf16.msra.mxu1 %v1570_v8  ;;  %1631 = vset.pattern.permute.xlu0 %v1677_v17  ;;  %1027 = vst.msk [vmem:[#allocation3 + $0x8] sm:$0xff] %vm1026_vm13, %v1695_v52 }
  0x1a   : > { %1504 = vmatmul.msk.bf16.vlgmr.msra.gmra.mxu0 %vm625_vm0, %v602_v11  ;;  %742 = vperm.xlu0 %1631, %v1831_v5  }
  0x1b   : > { %1633 = vset.pattern.permute.xlu1 %v1675_v12 }
  0x1c   : > { %778 = vperm.xlu1 %1633, %v1831_v5   ;;  %1635 = vset.pattern.permute.xlu2 %v1681_v22 }
  0x1d   : > { %716 = vmatpush.bf16.msra.mxu1 %v1569_v10  ;;  %814 = vperm.xlu2 %1635, %v1831_v5  }
  0x21   : > { %717 = vmatpush.bf16.msra.mxu1 %v1568_v14 }
  0x22   : > { %1638 = vset.pattern.permute.xlu0 %v1682_v23 }
  0x23   : > { %861 = vperm.xlu0 %1638, %v1831_v5  }
  0x24   : > { %1636 = vset.pattern.permute.xlu1 %v1676_v13 }
  0x25   : > { %832 = vperm.xlu1 %1636, %v1831_v5   ;;  %718 = vmatpush.bf16.msra.mxu1 %v1567_v15 }
  0x26   : > { %1637 = vset.pattern.permute.xlu2 %v1684_v25 }
  0x27   : > { %850 = vperm.xlu2 %1637, %v1831_v5  }
  0x29   : > { %719 = vmatpush.bf16.msra.mxu1 %v1566_v16  ;;  %v951_v16 = vld [vmem:[%s2041_s6] sm:$0xff] }
  0x2b   : > { %1643 = vset.pattern.permute.xlu0 %v1685_v27 }
  0x2c   : > { %916 = vperm.xlu0 %1643, %v1831_v5  }
  0x2d   : > { %1639 = vset.pattern.permute.xlu1 %v1679_v19  ;;  %720 = vmatpush.bf16.msra.mxu1 %v1565_v20 }
  0x2e   : > { %872 = vperm.xlu1 %1639, %v1831_v5  }
  0x2f   : > { %1640 = vset.pattern.permute.xlu2 %v1686_v32 }
  0x30   : > { %883 = vperm.xlu2 %1640, %v1831_v5  }
  0x34   : > { %1648 = vset.pattern.permute.xlu0 %v1673_v1 }
  0x36   : > { %1641 = vset.pattern.permute.xlu1 %v1680_v21 }
  0x37   : > { %894 = vperm.xlu1 %1641, %v1831_v5  }
  0x38   : > { %1642 = vset.pattern.permute.xlu2 %v1688_v38 }
  0x39   : > { %905 = vperm.xlu2 %1642, %v1831_v5  }
  0x3f   : > { %1644 = vset.pattern.permute.xlu1 %v1683_v24 }
  0x40   : > { %927 = vperm.xlu1 %1644, %v1831_v5  }
  0x41   : > { %1645 = vset.pattern.permute.xlu2 %v1689_v41 }
  0x42   : > { %938 = vperm.xlu2 %1645, %v1831_v5  }
  0x48   : > { %1646 = vset.pattern.permute.xlu1 %v1673_v1 }
  0x49   : > { %736 = vperm.xlu1 %1646, %v1831_v5  }
  0x4a   : > { %1647 = vset.pattern.permute.xlu2 %v1673_v1 }
  0x6e   : > { %v797_v44 = vpop.permute.xlu2 %796 }
  0x6f   : > { %v799_v51 = vmul.f32 0.0, %v797_v44 }
  0x77   : > { %v815_v45 = vpop.permute.xlu2 %814 }
  0x78   : > { %v817_v46 = vmul.f32 0.0, %v815_v45 }
  0x81   : > { %v851_v54 = vpop.permute.xlu2 %850 }
  0x83   : > { %v611_v26 = vpop.permute.xlu0 %610 }
  0x85   : > { %v761_v34 = vpop.permute.xlu1 %760 }
  0x86   : > { %v763_v35 = vmul.f32 0.0, %v761_v34 }
  0x88   : > { %767 = vrot.lane.b32.xlu1 %v763_v35, %s1687_s23 }
  0x8a   : > { %v884_v61 = vpop.permute.xlu2 %883 }
  0x8c   : > { %v743_v49 = vpop.permute.xlu0 %742 }
  0x8d   : > { %v745_v50 = vmul.f32 0.0, %v743_v49 }
  0x8e   : > { %v779_v42 = vpop.permute.xlu1 %778 }
  0x8f   : > { %v781_v43 = vmul.f32 0.0, %v779_v42  ;;  %749 = vrot.lane.b32.xlu2 %v745_v50, %s1693_s27 }
  0x90   : > { %821 = vrot.lane.b32.xlu1 %v817_v46, %s1691_s3 }
  0x91   : > { %785 = vrot.lane.b32.xlu0 %v781_v43, %s1690_s24 }
  0x93   : > { %v906_v5 = vpop.permute.xlu2 %905 }
  0x95   : > { %v862_v1 = vpop.permute.xlu0 %861 }
  0x97   : > { %v638_v28 = vpop.f32.mrf.mxu0  ;;  %v833_v47 = vpop.permute.xlu1 %832  ;;  %803 = vrot.lane.b32.xlu2 %v799_v51, %s1694_s28 }
  0x98   : > { %v639_v29 = vadd.f32 %v638_v28, %v611_v26  ;;  %v835_v48 = vmul.f32 0.0, %v833_v47 }
  0x9a   : > { %v643_v30 = vmin.f32 %v639_v29, 0.0  ;;  %vm642_vm1 = vcmp.gt.f32.partialorder %v639_v29, 0.0  ;;  %839 = vrot.lane.b32.xlu0 %v835_v48, %s1692_s26 }
  0x9c   : > { %v644_v31 = vmul.f32 1.442695, %v643_v30  ;;  %v939_v10 = vpop.permute.xlu2 %938 }
  0x9e   : > { %1649 = vpow2.f32 %v644_v31  ;;  %v917_v11 = vpop.permute.xlu0 %916 }
  0x9f   : > { %v640_v33 = vpop.f32.mrf.mxu0 }
  0xa0   : > { %v873_v0 = vpop.permute.xlu1 %872 }
  0xa4   : > { %v1650_v36 = vpop.eup %1649 }
  0xa5   : > { %v1505_v37 = vadd.f32 -1.0, %v1650_v36 }
  0xa7   : > { %v647_v39 = vsel %vm642_vm1, %v639_v29, %v1505_v37  ;;  %vm1037_vm1 = vcmask 23552  }
  0xa8   : > { %v648_v40 = vpack.c.bf16 %v647_v39, %v647_v39 }
  0xa9   : > { %v895_v6 = vpop.permute.xlu1 %894 }
  0xaa   : > { %721 = vmatmul.bf16.vlgmr.msra.gmra.mxu1 %v648_v40 }
  0xb2   : > { %v928_v12 = vpop.permute.xlu1 %927 }
  0xbb   : > { %v737_v18 = vpop.permute.xlu1 %736 }
  0xbc   : > { %v739_v27 = vmul.f32 0.0, %v737_v18 }
  0xe9   : > { %v750_v17 = vpop.permute.xlu2 %749 }
  0xf1   : > { %v804_v20 = vpop.permute.xlu2 %803 }
  0xfa   : > { %v768_v21 = vpop.permute.xlu1 %767 }
 0x102   : > { %v822_v24 = vpop.permute.xlu1 %821 }
 0x103   : > { %v786_v19 = vpop.permute.xlu0 %785 }
 0x10c   : > { %v840_v23 = vpop.permute.xlu0 %839 }
 0x127   : > { %v722_v53 = vpop.f32.mrf.mxu1 }
 0x128   : > { %729 = vst.msk [vmem:[#allocation2 + $0x8] sm:$0xff] %vm625_vm0, %v722_v53 }
 0x12f   : > { %v733_v55 = vld [vmem:[#allocation2 + $0x8] sm:$0xff]  ;;  %v724_v56 = vpop.f32.mrf.mxu1 }
 0x130   : > { %v782_v57 = vmul.f32 %v779_v42, %v733_v55  ;;  %v764_v58 = vmul.f32 %v761_v34, %v733_v55  ;;  %v746_v59 = vmul.f32 %v743_v49, %v733_v55  ;;  %v836_v60 = vmul.f32 %v833_v47, %v733_v55 }
 0x131   : > { %v818_v62 = vmul.f32 %v815_v45, %v733_v55  ;;  %v800_v63 = vmul.f32 %v797_v44, %v733_v55  ;;  %v875_v2 = vmul.f32 %v873_v0, %v733_v55  ;;  %v853_v3 = vmul.f32 %v851_v54, %v733_v55 }
 0x132   : > { %787 = vrot.lane.b32.xlu1 %v782_v57, %s1690_s24  ;;  %769 = vrot.lane.b32.xlu2 %v764_v58, %s1687_s23  ;;  %v864_v4 = vmul.f32 %v862_v1, %v733_v55  ;;  %v908_v7 = vmul.f32 %v906_v5, %v733_v55  ;;  %v886_v8 = vmul.f32 %v884_v61, %v733_v55  ;;  %s1702_s23 = smov 113   ;;  %s1703_s24 = smov 115  }
 0x133   : > { %751 = vrot.lane.b32.xlu0 %v746_v59, %s1693_s27  ;;  %v897_v9 = vmul.f32 %v895_v6, %v733_v55  ;;  %v941_v13 = vmul.f32 %v939_v10, %v733_v55  ;;  %v919_v14 = vmul.f32 %v917_v11, %v733_v55  ;;  %v930_v15 = vmul.f32 %v928_v12, %v733_v55 }
 0x134   : > { %v740_v25 = vmul.f32 %v737_v18, %v733_v55 }
 0x13a   : > { %841 = vrot.lane.b32.xlu1 %v836_v60, %s1692_s26  ;;  %823 = vrot.lane.b32.xlu2 %v818_v62, %s1691_s3  ;;  %s1704_s3 = smov 114   ;;  %s1710_s26 = smov 6  }
 0x13b   : > { %805 = vrot.lane.b32.xlu0 %v800_v63, %s1694_s28  ;;  %s1705_s28 = smov 7  }
 0x142   : > { %877 = vrot.lane.b32.xlu1 %v875_v2, %s1696_s29  ;;  %855 = vrot.lane.b32.xlu2 %v853_v3, %s1697_s20  ;;  %s1495_s29 = sshll.u32 %s2065_s30, 2 }
 0x143   : > { %866 = vrot.lane.b32.xlu0 %v864_v4, %s1698_s21  ;;  %s1706_s21 = smov 2  }
 0x14a   : > { %910 = vrot.lane.b32.xlu1 %v908_v7, %s1699_s1  ;;  %888 = vrot.lane.b32.xlu2 %v886_v8, %s1700_s22  ;;  %s600_s22 = scalar_lea.vmem %s2054_s19, %s1495_s29 }
 0x14b   : > { %899 = vrot.lane.b32.xlu0 %v897_v9, %s1701_s2 }
 0x152   : > { %943 = vrot.lane.b32.xlu1 %v941_v13, %s1702_s23  ;;  %921 = vrot.lane.b32.xlu2 %v919_v14, %s1703_s24  ;;  %s1707_s24 = smov 1  }
 0x153   : > { %932 = vrot.lane.b32.xlu0 %v930_v15, %s1704_s3  ;;  %s1708_s3 = smov 3  }
 0x15a   : > { %954 = vperm.xlu1 %1646, %v951_v16  }
 0x162   : > { %1045 = vrot.lane.b32.xlu1 %v1695_v52, %s1706_s21 }
 0x18c   : > { %v770_v22 = vpop.permute.xlu2 %769 }
 0x18d   : > { %v772_v33 = vsel %vm771_vm4, %v768_v21, %v770_v22  ;;  %v1574_v21 = vld [vmem:[%s2042_s7 + $0x8] sm:$0xff] }
 0x18e   : > { %1018 = vmatpush.bf16.msra.mxu3 %v1574_v21 }
 0x194   : > { %v824_v28 = vpop.permute.xlu2 %823 }
 0x195   : > { %v826_v45 = vsel %vm825_vm7, %v822_v24, %v824_v28 }
 0x19c   : > { %v856_v43 = vpop.permute.xlu2 %855 }
 0x1a4   : > { %v788_v26 = vpop.permute.xlu1 %787  ;;  %v889_v59 = vpop.permute.xlu2 %888 }
 0x1a5   : > { %v752_v29 = vpop.permute.xlu0 %751  ;;  %v790_v36 = vsel %vm789_vm5, %v786_v19, %v788_v26  ;;  %vm1238_vm5 = vcmask 31744  }
 0x1a6   : > { %v754_v30 = vsel %vm753_vm3, %v750_v17, %v752_v29  ;;  %v758_v31 = vadd.f32 %v752_v29, %v740_v25 }
 0x1a7   : > { %v757_v32 = vadd.f32 %v754_v30, %v739_v27 }
 0x1a8   : > { %v776_v34 = vadd.f32 %v770_v22, %v758_v31  ;;  %v1573_v22 = vld [vmem:[%s2042_s7] sm:$0xff] }
 0x1a9   : > { %v775_v35 = vadd.f32 %v772_v33, %v757_v32  ;;  %1019 = vmatpush.bf16.msra.mxu3 %v1573_v22 }
 0x1aa   : > { %v794_v38 = vadd.f32 %v788_v26, %v776_v34 }
 0x1ab   : > { %v793_v39 = vadd.f32 %v790_v36, %v775_v35 }
 0x1ac   : > { %v842_v37 = vpop.permute.xlu1 %841  ;;  %v922_v5 = vpop.permute.xlu2 %921 }
 0x1ad   : > { %v806_v40 = vpop.permute.xlu0 %805  ;;  %v844_v48 = vsel %vm843_vm8, %v840_v23, %v842_v37 }
 0x1ae   : > { %v808_v41 = vsel %vm807_vm6, %v804_v20, %v806_v40  ;;  %v812_v42 = vadd.f32 %v806_v40, %v794_v38  ;;  %v948_v20 = vld [vmem:[%s2040_s5] sm:$0xf]  ;;  %vm1226_vm6 = vcmask 48128  }
 0x1af   : > { %v811_v44 = vadd.f32 %v808_v41, %v793_v39 }
 0x1b0   : > { %v830_v46 = vadd.f32 %v824_v28, %v812_v42 }
 0x1b1   : > { %v829_v47 = vadd.f32 %v826_v45, %v811_v44 }
 0x1b2   : > { %v848_v49 = vadd.f32 %v842_v37, %v830_v46 }
 0x1b3   : > { %v847_v50 = vadd.f32 %v844_v48, %v829_v47 }
 0x1b4   : > { %v878_v51 = vpop.permute.xlu1 %877  ;;  %v859_v53 = vadd.f32 %v856_v43, %v848_v49 }
 0x1b5   : > { %v858_v54 = vadd.f32 %v856_v43, %v847_v50  ;;  %v867_v55 = vpop.permute.xlu0 %866  ;;  %v1072_v43 = vld [vmem:[%s2044_s9] sm:$0xff] }
 0x1b6   : > { %v870_v56 = vadd.f32 %v867_v55, %v859_v53 }
 0x1b7   : > { %v869_v57 = vadd.f32 %v867_v55, %v858_v54 }
 0x1b8   : > { %v881_v58 = vadd.f32 %v878_v51, %v870_v56 }
 0x1b9   : > { %v880_v60 = vadd.f32 %v878_v51, %v869_v57  ;;  %v1067_v51 = vld [vmem:[%s2043_s8] sm:$0xf] }
 0x1ba   : > { %v892_v62 = vadd.f32 %v889_v59, %v881_v58 }
 0x1bb   : > { %v891_v61 = vadd.f32 %v889_v59, %v880_v60 }
 0x1bc   : > { %v911_v63 = vpop.permute.xlu1 %910 }
 0x1bd   : > { %v900_v0 = vpop.permute.xlu0 %899 }
 0x1be   : > { %v902_v1 = vadd.f32 %v900_v0, %v891_v61  ;;  %v903_v2 = vadd.f32 %v900_v0, %v892_v62 }
 0x1c0   : > { %v913_v3 = vadd.f32 %v911_v63, %v902_v1  ;;  %v914_v4 = vadd.f32 %v911_v63, %v903_v2  ;;  %v1187_v1 = vld [vmem:[%s2047_s12] sm:$0xf] }
 0x1c1   : > { %v1151_v2 = vld [vmem:[%s2046_s11] sm:$0xff] }
 0x1c2   : > { %v924_v6 = vadd.f32 %v922_v5, %v913_v3  ;;  %v925_v7 = vadd.f32 %v922_v5, %v914_v4 }
 0x1c4   : > { %v944_v11 = vpop.permute.xlu1 %943 }
 0x1c5   : > { %v933_v8 = vpop.permute.xlu0 %932 }
 0x1c6   : > { %v935_v9 = vadd.f32 %v933_v8, %v924_v6  ;;  %v936_v10 = vadd.f32 %v933_v8, %v925_v7 }
 0x1c8   : > { %v946_v12 = vadd.f32 %v944_v11, %v935_v9  ;;  %v947_v13 = vadd.f32 %v944_v11, %v936_v10 }
 0x1ca   : > { %v949_v14 = vpack.c.bf16 %v946_v12, %v946_v12  ;;  %v950_v15 = vpack.c.bf16 %v947_v13, %v947_v13 }
 0x1cc   : > { %959 = vrot.lane.b32.xlu2 %v949_v14, %s1705_s28  ;;  %961 = vrot.lane.b32.xlu0 %v950_v15, %s1705_s28  ;;  %v955_v23 = vpop.permute.xlu1 %954  ;;  %v1146_v14 = vld [vmem:[%s2045_s10] sm:$0xf] }
 0x1d4   : > { %1057 = vrot.lane.b32.xlu2 %v1695_v52, %s1707_s24  ;;  %v1046_v40 = vpop.permute.xlu1 %1045 }
 0x226   : > { %v960_v16 = vpop.permute.xlu2 %959 }
 0x22e   : > { %v1058_v39 = vpop.permute.xlu2 %1057 }
 0x23e   : > { %v962_v17 = vpop.permute.xlu0 %961 }
 0x23f   : > { %v964_v18 = vsel %vm963_vm9, %v960_v16, %v962_v17  ;;  %vm1416_vm9 = vcmask 1041409  }
 0x240   : > { %v971_v19 = vsel %vm969_vm10, %v964_v18, 0 }
 0x241   : > { %980 = vmatpush.bf16.msra.mxu2 %v971_v19 }
 0x244   : > { %1538 = vmatmul.msk.bf16.vlgmr.msra.gmra.mxu2 %vm965_vm11, %v948_v20 }
 0x2c7   : > { %v982_v24 = vpop.f32.mrf.mxu2 }
 0x2c8   : > { %v983_v25 = vadd.f32 %v982_v24, %v955_v23 }
 0x2ca   : > { %v987_v26 = vmin.f32 %v983_v25, 0.0  ;;  %vm986_vm12 = vcmp.gt.f32.partialorder %v983_v25, 0.0 }
 0x2cc   : > { %v988_v27 = vmul.f32 1.442695, %v987_v26 }
 0x2ce   : > { %1651 = vpow2.f32 %v988_v27 }
 0x2cf   : > { %v984_v28 = vpop.f32.mrf.mxu2 }
 0x2d4   : > { %v1652_v29 = vpop.eup %1651 }
 0x2d5   : > { %v1539_v30 = vadd.f32 -1.0, %v1652_v29 }
 0x2d7   : > { %v991_v31 = vsel %vm986_vm12, %v983_v25, %v1539_v30  ;;  %vm1420_vm12 = vcmask 1043459  }
 0x2d8   : > { %v992_v32 = vpack.c.bf16 %v991_v31, %v991_v31 }
 0x2da   : > { %1548 = vmatmul.msk.bf16.vlgmr.msra.gmra.mxu3 %vm625_vm0, %v992_v32 }
 0x35d   : > { %v1021_v33 = vpop.f32.mrf.mxu3 }
 0x35e   : > { %1028 = vst.msk [vmem:[#allocation3 + $0x8] sm:$0xff] %vm965_vm11, %v1021_v33  ;;  %v1188_v34 = vpack.c.bf16 %v1021_v33, %v1021_v33 }
 0x360   : > { %v1193_v35 = vsel %vm969_vm10, %v1188_v34, 0  ;;  %vm1418_vm10 = vcmask 1042434  }
 0x361   : > { %1202 = vmatpush.bf16.msrb.mxu3 %v1193_v35  ;;  %v1260_v35 = vld [vmem:[%s2049_s14] sm:$0xff] }
 0x364   : > { %1553 = vmatmul.msk.bf16.vlgmr.msrb.gmra.mxu3 %vm965_vm11, %v1187_v1 }
 0x365   : > { %v1023_v36 = vpop.f32.mrf.mxu3  ;;  %v1054_v37 = vld [vmem:[#allocation3 + $0x8] sm:$0xff] }
 0x366   : > { %1059 = vrot.lane.b32.xlu0 %v1054_v37, %s1707_s24  ;;  %1047 = vrot.lane.b32.xlu2 %v1054_v37, %s1706_s21  ;;  %1066 = vst.msk [vmem:[#allocation4 + $0x18] sm:$0xff] %vm965_vm11, %v1054_v37 }
 0x367   : > { %1035 = vrot.lane.b32.xlu1 %v1054_v37, %s1708_s3  ;;  %1109 = vst.msk [vmem:[#allocation3 + $0x8] sm:$0xff] %vm1026_vm13, %v1695_v52 }
 0x36d   : > { %v1071_v38 = vld [vmem:[#allocation4 + $0x18] sm:$0xff] }
 0x36e   : > { %1093 = vmatpush.msrb.mxu2 %v1071_v38  ;;  %1033 = vrot.lane.b32.xlu0 %v1695_v52, %s1708_s3 }
 0x36f   : > { %1075 = vperm.xlu2 %1647, %v1072_v43  }
 0x376   : > { %1137 = vrot.lane.b32.xlu0 %v1695_v52, %s1707_s24 }
 0x377   : > { %1126 = vrot.lane.b32.xlu2 %v1695_v52, %s1706_s21 }
 0x3c0   : > { %v1048_v41 = vpop.permute.xlu2 %1047 }
 0x3c1   : > { %v1050_v42 = vsel %vm1049_vm14, %v1046_v40, %v1048_v41 }
 0x3c2   : > { %1052 = vst.msk [vmem:[#allocation4 + $0x8] sm:$0xff] %vm965_vm11, %v1050_v42 }
 0x3c9   : > { %v1069_v50 = vld [vmem:[#allocation4 + $0x8] sm:$0xff]  ;;  %v1076_v54 = vpop.permute.xlu2 %1075 }
 0x3d1   : > { %v1127_v4 = vpop.permute.xlu2 %1126 }
 0x3d8   : > { %v1060_v44 = vpop.permute.xlu0 %1059 }
 0x3d9   : > { %v1062_v45 = vsel %vm1061_vm15, %v1058_v39, %v1060_v44  ;;  %v1036_v46 = vpop.permute.xlu1 %1035 }
 0x3da   : > { %1064 = vst.msk [vmem:[#allocation4 + $0x10] sm:$0xff] %vm965_vm11, %v1062_v45 }
 0x3e0   : > { %v1034_v47 = vpop.permute.xlu0 %1033 }
 0x3e1   : > { %v1038_v48 = vsel %vm1037_vm1, %v1034_v47, %v1036_v46  ;;  %v1070_v49 = vld [vmem:[#allocation4 + $0x10] sm:$0xff]  ;;  %v1255_v47 = vld [vmem:[%s2048_s13] sm:$0xf] }
 0x3e2   : > { %1040 = vst.msk [vmem:[#allocation4] sm:$0xff] %vm965_vm11, %v1038_v48  ;;  %1094 = vmatpush.msrb.mxu2 %v1070_v49 }
 0x3e4   : > { %1095 = vmatpush.msrb.mxu2 %v1069_v50 }
 0x3e7   : > { %v1204_v16 = vpop.f32.mrf.mxu3 }
 0x3e8   : > { %v1138_v3 = vpop.permute.xlu0 %1137 }
 0x3e9   : > { %v1068_v53 = vld [vmem:[#allocation4] sm:$0xff] }
 0x3ea   : > { %1096 = vmatpush.msrb.mxu2 %v1068_v53 }
 0x3eb   : > { %1549 = vmatmul.msk.bf16.vlgmr.msrb.gmra.mxu2 %vm625_vm0, %v1067_v51 }
 0x3ef   : > { %v1206_v17 = vpop.f32.mrf.mxu3 }
 0x46e   : > { %v1098_v55 = vpop.f32.mrf.mxu2 }
 0x46f   : > { %v1099_v56 = vadd.f32 %v1098_v55, %v1076_v54 }
 0x471   : > { %v1103_v57 = vmin.f32 %v1099_v56, 0.0  ;;  %vm1102_vm2 = vcmp.gt.f32.partialorder %v1099_v56, 0.0 }
 0x473   : > { %v1104_v58 = vmul.f32 1.442695, %v1103_v57 }
 0x475   : > { %1653 = vpow2.f32 %v1104_v58 }
 0x476   : > { %v1100_v59 = vpop.f32.mrf.mxu2 }
 0x47b   : > { %v1654_v60 = vpop.eup %1653 }
 0x47c   : > { %v1550_v61 = vadd.f32 -1.0, %v1654_v60  ;;  %v1339_v60 = vld [vmem:[%s2051_s16] sm:$0xff] }
 0x47e   : > { %v1107_v62 = vsel %vm1102_vm2, %v1099_v56, %v1550_v61 }
 0x47f   : > { %1110 = vst.msk [vmem:[#allocation3 + $0x8] sm:$0xff] %vm965_vm11, %v1107_v62 }
 0x486   : > { %v1134_v63 = vld [vmem:[#allocation3 + $0x8] sm:$0xff] }
 0x487   : > { %1139 = vrot.lane.b32.xlu1 %v1134_v63, %s1707_s24  ;;  %1128 = vrot.lane.b32.xlu0 %v1134_v63, %s1706_s21  ;;  %1145 = vst.msk [vmem:[#allocation4 + $0x18] sm:$0xff] %vm965_vm11, %v1134_v63 }
 0x488   : > { %1117 = vrot.lane.b32.xlu2 %v1134_v63, %s1708_s3  ;;  %1216 = vst.msk [vmem:[#allocation3 + $0x8] sm:$0xff] %vm1026_vm13, %v1695_v52 }
 0x48e   : > { %v1150_v0 = vld [vmem:[#allocation4 + $0x18] sm:$0xff] }
 0x48f   : > { %1172 = vmatpush.msrb.mxu0 %v1150_v0  ;;  %1115 = vrot.lane.b32.xlu1 %v1695_v52, %s1708_s3  ;;  %s1709_s3 = smov 4  }
 0x490   : > { %1154 = vperm.xlu0 %1648, %v1151_v2  }
 0x497   : > { %1246 = vrot.lane.b32.xlu1 %v1695_v52, %s1706_s21 }
 0x498   : > { %1222 = vrot.lane.b32.xlu0 %v1695_v52, %s1710_s26 }
 0x49f   : > { %1234 = vrot.lane.b32.xlu1 %v1695_v52, %s1709_s3 }
 0x4a0   : > { %1325 = vrot.lane.b32.xlu0 %v1695_v52, %s1706_s21 }
 0x4e2   : > { %v1118_v9 = vpop.permute.xlu2 %1117 }
 0x4f9   : > { %v1140_v5 = vpop.permute.xlu1 %1139  ;;  %v1129_v6 = vpop.permute.xlu0 %1128 }
 0x4fa   : > { %v1141_v7 = vsel %vm1061_vm15, %v1138_v3, %v1140_v5  ;;  %v1130_v8 = vsel %vm1049_vm14, %v1127_v4, %v1129_v6 }
 0x4fb   : > { %1143 = vst.msk [vmem:[#allocation4 + $0x10] sm:$0xff] %vm965_vm11, %v1141_v7 }
 0x4fc   : > { %1132 = vst.msk [vmem:[#allocation4 + $0x8] sm:$0xff] %vm965_vm11, %v1130_v8  ;;  %v1334_v8 = vld [vmem:[%s2050_s15] sm:$0xf] }
 0x501   : > { %v1116_v10 = vpop.permute.xlu1 %1115 }
 0x502   : > { %v1119_v11 = vsel %vm1037_vm1, %v1116_v10, %v1118_v9  ;;  %v1149_v12 = vld [vmem:[#allocation4 + $0x10] sm:$0xff]  ;;  %v1155_v18 = vpop.permute.xlu0 %1154 }
 0x503   : > { %1121 = vst.msk [vmem:[#allocation4] sm:$0xff] %vm965_vm11, %v1119_v11  ;;  %1173 = vmatpush.msrb.mxu0 %v1149_v12  ;;  %v1148_v13 = vld [vmem:[#allocation4 + $0x8] sm:$0xff] }
 0x505   : > { %1174 = vmatpush.msrb.mxu0 %v1148_v13 }
 0x509   : > { %v1247_v36 = vpop.permute.xlu1 %1246 }
 0x50a   : > { %v1147_v15 = vld [vmem:[#allocation4] sm:$0xff]  ;;  %v1223_v44 = vpop.permute.xlu0 %1222 }
 0x50b   : > { %1175 = vmatpush.msrb.mxu0 %v1147_v15 }
 0x50c   : > { %1551 = vmatmul.msk.bf16.vlgmr.msrb.gmra.mxu0 %vm625_vm0, %v1146_v14 }
 0x511   : > { %v1235_v39 = vpop.permute.xlu1 %1234 }
 0x512   : > { %v1326_v62 = vpop.permute.xlu0 %1325 }
 0x589   : > { %v1177_v19 = vpop.f32.mrf.mxu0 }
 0x58a   : > { %v1178_v20 = vadd.f32 %v1177_v19, %v1155_v18 }
 0x58c   : > { %v1182_v21 = vmin.f32 %v1178_v20, 0.0  ;;  %vm1181_vm3 = vcmp.gt.f32.partialorder %v1178_v20, 0.0 }
 0x58e   : > { %v1183_v22 = vmul.f32 1.442695, %v1182_v21 }
 0x590   : > { %1655 = vpow2.f32 %v1183_v22  ;;  %v1583_v22 = vld [vmem:[%s2052_s17 + $0x8] sm:$0xff]  }
 0x591   : > { %v1179_v23 = vpop.f32.mrf.mxu0 }
 0x592   : > { %v1576_v23 = vld [vmem:[%s2052_s17] sm:$0xff]  }
 0x596   : > { %v1656_v24 = vpop.eup %1655 }
 0x597   : > { %v1552_v25 = vadd.f32 -1.0, %v1656_v24 }
 0x599   : > { %v1186_v26 = vsel %vm1181_vm3, %v1178_v20, %v1552_v25  ;;  %v1581_v25 = vunpack.c.l.bf16 %v1583_v22 }
 0x59a   : > { %v1208_v27 = vadd.f32 %v1204_v16, %v1186_v26  ;;  %v1578_v26 = vunpack.c.h.bf16 %v1576_v23 }
 0x59c   : > { %v1210_v28 = vmin.f32 %v1208_v27, 0.0  ;;  %vm1209_vm4 = vcmp.gt.f32.partialorder %v1208_v27, 0.0 }
 0x59e   : > { %v1211_v29 = vmul.f32 1.442695, %v1210_v28 }
 0x5a0   : > { %1657 = vpow2.f32 %v1211_v29 }
 0x5a6   : > { %v1658_v30 = vpop.eup %1657 }
 0x5a7   : > { %v1554_v31 = vadd.f32 -1.0, %v1658_v30 }
 0x5a9   : > { %v1969_v32 = vsel %vm1209_vm4, %v1208_v27, %v1554_v31  ;;  %v1577_v27 = vunpack.c.l.bf16 %v1576_v23 }
 0x5aa   : > { %1217 = vst.msk [vmem:[#allocation3 + $0x8] sm:$0xff] %vm965_vm11, %v1969_v32 }
 0x5b1   : > { %v1253_v33 = vld [vmem:[#allocation3 + $0x8] sm:$0xff] }
 0x5b2   : > { %1254 = vst.msk [vmem:[#allocation4 + $0x18] sm:$0xff] %vm965_vm11, %v1253_v33  ;;  %1248 = vrot.lane.b32.xlu2 %v1253_v33, %s1706_s21  ;;  %1224 = vrot.lane.b32.xlu1 %v1253_v33, %s1710_s26 }
 0x5b3   : > { %1297 = vst.msk [vmem:[#allocation3 + $0x8] sm:$0xff] %vm1026_vm13, %v1695_v52  ;;  %vm1423_vm13 = vcmask 60416  }
 0x5b9   : > { %v1259_v34 = vld [vmem:[#allocation4 + $0x18] sm:$0xff] }
 0x5ba   : > { %1281 = vmatpush.msra.mxu2 %v1259_v34  ;;  %1236 = vrot.lane.b32.xlu2 %v1253_v33, %s1709_s3 }
 0x5c2   : > { %1263 = vperm.xlu2 %1647, %v1260_v35  }
 0x5ca   : > { %1314 = vrot.lane.b32.xlu2 %v1695_v52, %s1709_s3 }
 0x60c   : > { %v1249_v37 = vpop.permute.xlu2 %1248 }
 0x60d   : > { %v1250_v38 = vsel %vm1049_vm14, %v1247_v36, %v1249_v37  ;;  %v1582_v36 = vunpack.c.h.bf16 %v1583_v22 }
 0x60e   : > { %1252 = vst.msk [vmem:[#allocation4 + $0x10] sm:$0xff] %vm965_vm11, %v1250_v38 }
 0x614   : > { %v1237_v40 = vpop.permute.xlu2 %1236 }
 0x615   : > { %v1239_v41 = vsel %vm1238_vm5, %v1235_v39, %v1237_v40  ;;  %v1258_v42 = vld [vmem:[#allocation4 + $0x10] sm:$0xff]  ;;  %v1410_v39 = vlaneseq }
 0x616   : > { %1241 = vst.msk [vmem:[#allocation4 + $0x8] sm:$0xff] %vm965_vm11, %v1239_v41  ;;  %1282 = vmatpush.msra.mxu2 %v1258_v42 }
 0x617   : > { %v1411_v40 = vand.u32 127, %v1410_v39 }
 0x61c   : > { %v1264_v49 = vpop.permute.xlu2 %1263 }
 0x61d   : > { %v1257_v43 = vld [vmem:[#allocation4 + $0x8] sm:$0xff] }
 0x61e   : > { %1283 = vmatpush.msra.mxu2 %v1257_v43 }
 0x624   : > { %v1225_v45 = vpop.permute.xlu1 %1224  ;;  %v1315_v63 = vpop.permute.xlu2 %1314 }
 0x625   : > { %v1227_v46 = vsel %vm1226_vm6, %v1223_v44, %v1225_v45 }
 0x626   : > { %1229 = vst.msk [vmem:[#allocation4] sm:$0xff] %vm965_vm11, %v1227_v46 }
 0x62d   : > { %v1256_v48 = vld [vmem:[#allocation4] sm:$0xff] }
 0x62e   : > { %1284 = vmatpush.msra.mxu2 %v1256_v48 }
 0x62f   : > { %1555 = vmatmul.msk.bf16.vlgmr.msra.gmra.mxu2 %vm625_vm0, %v1255_v47 }
 0x6b2   : > { %v1286_v50 = vpop.f32.mrf.mxu2 }
 0x6b3   : > { %v1287_v51 = vadd.f32 %v1286_v50, %v1264_v49 }
 0x6b5   : > { %v1291_v53 = vmin.f32 %v1287_v51, 0.0  ;;  %vm1290_vm7 = vcmp.gt.f32.partialorder %v1287_v51, 0.0 }
 0x6b7   : > { %v1292_v54 = vmul.f32 1.442695, %v1291_v53 }
 0x6b9   : > { %1659 = vpow2.f32 %v1292_v54  ;;  %v1427_v54 = vld [vmem:[%s2053_s18] sm:$0xf] }
 0x6ba   : > { %v1288_v55 = vpop.f32.mrf.mxu2 }
 0x6bf   : > { %v1660_v56 = vpop.eup %1659 }
 0x6c0   : > { %v1556_v57 = vadd.f32 -1.0, %v1660_v56 }
 0x6c2   : > { %v1295_v58 = vsel %vm1290_vm7, %v1287_v51, %v1556_v57 }
 0x6c3   : > { %1298 = vst.msk [vmem:[#allocation3 + $0x8] sm:$0xff] %vm965_vm11, %v1295_v58 }
 0x6ca   : > { %v1332_v59 = vld [vmem:[#allocation3 + $0x8] sm:$0xff] }
 0x6cb   : > { %1333 = vst.msk [vmem:[#allocation4 + $0x18] sm:$0xff] %vm965_vm11, %v1332_v59  ;;  %1327 = vrot.lane.b32.xlu1 %v1332_v59, %s1706_s21  ;;  %1316 = vrot.lane.b32.xlu0 %v1332_v59, %s1709_s3 }
 0x6cc   : > { %1305 = vrot.lane.b32.xlu2 %v1332_v59, %s1710_s26 }
 0x6d2   : > { %v1338_v61 = vld [vmem:[#allocation4 + $0x18] sm:$0xff] }
 0x6d3   : > { %1360 = vmatpush.msra.mxu0 %v1338_v61  ;;  %1303 = vrot.lane.b32.xlu1 %v1695_v52, %s1710_s26 }
 0x6d4   : > { %1342 = vperm.xlu0 %1648, %v1339_v60  }
 0x726   : > { %v1306_v4 = vpop.permute.xlu2 %1305 }
 0x73d   : > { %v1328_v0 = vpop.permute.xlu1 %1327  ;;  %v1317_v1 = vpop.permute.xlu0 %1316 }
 0x73e   : > { %v1329_v2 = vsel %vm1049_vm14, %v1326_v62, %v1328_v0  ;;  %v1318_v3 = vsel %vm1238_vm5, %v1315_v63, %v1317_v1 }
 0x73f   : > { %1331 = vst.msk [vmem:[#allocation4 + $0x10] sm:$0xff] %vm965_vm11, %v1329_v2 }
 0x740   : > { %1320 = vst.msk [vmem:[#allocation4 + $0x8] sm:$0xff] %vm965_vm11, %v1318_v3 }
 0x745   : > { %v1304_v5 = vpop.permute.xlu1 %1303 }
 0x746   : > { %v1307_v6 = vsel %vm1226_vm6, %v1304_v5, %v1306_v4  ;;  %v1337_v7 = vld [vmem:[#allocation4 + $0x10] sm:$0xff]  ;;  %v1343_v10 = vpop.permute.xlu0 %1342 }
 0x747   : > { %1309 = vst.msk [vmem:[#allocation4] sm:$0xff] %vm965_vm11, %v1307_v6  ;;  %1361 = vmatpush.msra.mxu0 %v1337_v7  ;;  %v1336_v52 = vld [vmem:[#allocation4 + $0x8] sm:$0xff] }
 0x749   : > { %1362 = vmatpush.msra.mxu0 %v1336_v52 }
 0x74e   : > { %v1335_v9 = vld [vmem:[#allocation4] sm:$0xff] }
 0x74f   : > { %1363 = vmatpush.msra.mxu0 %v1335_v9 }
 0x750   : > { %1557 = vmatmul.msk.bf16.vlgmr.msra.gmra.mxu0 %vm625_vm0, %v1334_v8 }
 0x7cd   : > { %v1365_v11 = vpop.f32.mrf.mxu0 }
 0x7ce   : > { %v1366_v12 = vadd.f32 %v1365_v11, %v1343_v10 }
 0x7d0   : > { %v1370_v13 = vmin.f32 %v1366_v12, 0.0  ;;  %vm1369_vm8 = vcmp.gt.f32.partialorder %v1366_v12, 0.0 }
 0x7d2   : > { %v1371_v14 = vmul.f32 1.442695, %v1370_v13 }
 0x7d4   : > { %1661 = vpow2.f32 %v1371_v14 }
 0x7d5   : > { %v1367_v15 = vpop.f32.mrf.mxu0 }
 0x7da   : > { %v1662_v16 = vpop.eup %1661 }
 0x7db   : > { %v1558_v17 = vadd.f32 -1.0, %v1662_v16 }
 0x7dd   : > { %v1374_v18 = vsel %vm1369_vm8, %v1366_v12, %v1558_v17 }
 0x7de   : > { %v1375_v19 = vadd.f32 %v1374_v18, %v1969_v32 }
 0x7e0   : > { %v1377_v20 = vmin.f32 %v1375_v19, 0.0  ;;  %vm1376_vm0 = vcmp.gt.f32.partialorder %v1375_v19, 0.0 }
 0x7e2   : > { %v1378_v21 = vmul.f32 1.442695, %v1377_v20 }
 0x7e4   : > { %1663 = vpow2.f32 %v1378_v21 }
 0x7ea   : > { %v1664_v24 = vpop.eup %1663 }
 0x7eb   : > { %v1559_v28 = vadd.f32 -1.0, %v1664_v24 }
 0x7ed   : > { %v1381_v29 = vsel %vm1376_vm0, %v1375_v19, %v1559_v28 }
 0x7ee   : > { %v1392_v30 = vmul.f32 %v1581_v25, %v1381_v29  ;;  %v1391_v31 = vmul.f32 %v1578_v26, %v1381_v29  ;;  %v1390_v32 = vmul.f32 %v1577_v27, %v1381_v29  ;;  %v1393_v37 = vmul.f32 %v1582_v36, %v1381_v29 }
 0x7f0   : > { %v1400_v33 = vsel %vm965_vm11, %v1392_v30, 0.0  ;;  %v1397_v34 = vsel %vm965_vm11, %v1391_v31, 0.0  ;;  %v1394_v35 = vsel %vm965_vm11, %v1390_v32, 0.0  ;;  %v1403_v38 = vsel %vm965_vm11, %v1393_v37, 0.0 }
 0x7f1   : > { %1401 = vadd.xlane.f32.xlu0 %v1400_v33  ;;  %1398 = vadd.xlane.f32.xlu2 %v1397_v34 }
 0x7f2   : > { %1395 = vadd.xlane.f32.xlu1 %v1394_v35 }
 0x7f9   : > { %1404 = vadd.xlane.f32.xlu2 %v1403_v38 }
 0x864   : > { %v1399_v41 = vpop.xlane.xlu2 %1398  ;;  %v1402_v43 = vpop.xlane.xlu0 %1401 }
 0x865   : > { %v1396_v42 = vpop.xlane.xlu1 %1395  ;;  %v1413_v44 = vperm.slane %v1399_v41, %v1411_v40  ;;  %v1414_v46 = vperm.slane %v1402_v43, %v1411_v40 }
 0x866   : > { %v1412_v45 = vperm.slane %v1396_v42, %v1411_v40 }
 0x868   : > { %v1417_v47 = vsel %vm1416_vm9, %v1413_v44, %v1412_v45 }
 0x869   : > { %v1419_v50 = vsel %vm1418_vm10, %v1414_v46, %v1417_v47 }
 0x86c   : > { %v1405_v48 = vpop.xlane.xlu2 %1404 }
 0x86d   : > { %v1415_v49 = vperm.slane %v1405_v48, %v1411_v40 }
 0x86f   : > { %v1421_v51 = vsel %vm1420_vm12, %v1415_v49, %v1419_v50 }
 0x870   : > { %v1424_v53 = vsel %vm1423_vm13, %v1421_v51, 0.0 }
 0x871   : > { %1425 = vadd.xlane.f32.xlu1 %v1424_v53 }
 0x8e4   : > { %v1426_v55 = vpop.xlane.xlu1 %1425 }
 0x8e5   : > { %v1428_v56 = vadd.f32 %v1427_v54, %v1426_v55 }
 0x8e7   : > { %1431 = vperm.xlu2 %1647, %v1428_v56  }
 0x941   : > { %v1432_v57 = vpop.permute.xlu2 %1431 }
 0x942   : > { %1434 = vst [vmem:[%s600_s22] sm:$0xf] %v1432_v57 }
 0x943 PF: > { %s29_s0 = sadd.s32 1, %s1671_s0  }
 0x944   : > { %p26_p4 = scmp.ge.s32.totalorder %s29_s0, 4  }
 0x946   :  { %28 = sbr.rel (!%p26_p4) target bundleno = 5 (0x5), region = 126 }

</bundles_post_ra>
